<compile_context>
chip_gen: v6e
topology: v6e:2x2x1
jax: 0.10.0
libtpu: 0.0.40
codegen_flags: <defaults>
</compile_context>

<pallas_src>
import jax
import jax.numpy as jnp
from jax.experimental import pallas as pl
from jax.experimental.pallas import tpu as pltpu


FEAT_DIM = 2048                  # matches nn.Linear(2048, cls_num, bias=False)
_N_PAD = 256                     # fused-head N padding (256-wide MXU tile)
_VMEM_LIMIT = 48 * 1024 * 1024   # safe on v5e/v6e (128 MiB) and v7x (64 MiB)


def _round_up(x, m):
    return (x + m - 1) // m * m


# ----------------------------------------------------------------------------
# Fused kernel: backbone matmul (K reduction) + ReLU + concatenated-head matmul
# ----------------------------------------------------------------------------
def _fused_net_kernel(x_ref, bbw_ref, clsw_ref, logits_ref, feats_ref, acc_ref):
    """grid = (2, nk): (feature-half c, contraction step k).

    acc_ref: f32 [B, FEAT_DIM//2] feature-half accumulator, resident across k.
    On the final k step: ReLU epilogue, write the feature half, then one MXU
    matmul against this half's rows of the concatenated classifier slab.
    """
    k = pl.program_id(1)

    @pl.when(k == 0)
    def _():
        acc_ref[...] = jnp.zeros_like(acc_ref)

    acc_ref[...] += jnp.dot(
        x_ref[...], bbw_ref[...], preferred_element_type=jnp.float32
    )

    @pl.when(k == pl.num_programs(1) - 1)
    def _():
        feats_f32 = jnp.maximum(acc_ref[...], 0.0)            # fused ReLU epilogue
        feats_ref[...] = feats_f32.astype(feats_ref.dtype)
        partial = jnp.dot(
            feats_f32.astype(clsw_ref.dtype), clsw_ref[...],
            preferred_element_type=jnp.float32,
        )
        logits_ref[...] = partial[None].astype(logits_ref.dtype)


@jax.jit
def fused_network_forward(x, backbone_w, cls_w_padded):
    """x: [B, K] bf16, backbone_w: [K, 2048] bf16, cls_w_padded: [2048, Np] bf16.

    Returns (logits_padded [B, Np] f32, feats [B, 2048] f32).
    """
    B, K = x.shape
    Kw, F = backbone_w.shape
    Fc, Np = cls_w_padded.shape
    assert K == Kw and F == Fc == FEAT_DIM, (x.shape, backbone_w.shape, cls_w_padded.shape)
    assert Np % 128 == 0, Np
    f_half = F // 2

    # K tiling: keep nk >= 2 so the next weight-tile DMA overlaps MXU work;
    # cap tk at 1024 so the double-buffered (tk, f_half) bf16 block stays at
    # 2 MiB/buffer on every generation (K is pre-padded by the caller).
    if K <= 256:
        tk = K
    elif K <= 2048:
        tk = K // 2
    else:
        tk = 1024
    assert K % tk == 0, (K, tk)
    nk = K // tk

    flops = 2 * B * K * F + 2 * B * F * Np
    bytes_accessed = (
        2 * x.size * x.dtype.itemsize              # x tiles re-fetched per F-half
        + backbone_w.size * backbone_w.dtype.itemsize
        + cls_w_padded.size * cls_w_padded.dtype.itemsize
        + 2 * B * Np * 4
        + B * F * 4
    )

    logits_parts, feats = pl.pallas_call(
        _fused_net_kernel,
        out_shape=(
            jax.ShapeDtypeStruct((2, B, Np), jnp.float32),   # per-half partial logits
            jax.ShapeDtypeStruct((B, F), jnp.float32),       # backbone features
        ),
        grid_spec=pltpu.PrefetchScalarGridSpec(
            num_scalar_prefetch=0,
            grid=(2, nk),
            in_specs=[
                pl.BlockSpec((B, tk), lambda c, k: (0, k)),        # activations
                pl.BlockSpec((tk, f_half), lambda c, k: (k, c)),   # backbone weight half
                pl.BlockSpec((f_half, Np), lambda c, k: (c, 0)),   # classifier rows half
            ],
            out_specs=(
                pl.BlockSpec((1, B, Np), lambda c, k: (c, 0, 0)),
                pl.BlockSpec((B, f_half), lambda c, k: (0, c)),
            ),
            scratch_shapes=[pltpu.VMEM((B, f_half), jnp.float32)],
        ),
        compiler_params=pltpu.CompilerParams(
            dimension_semantics=("parallel", "arbitrary"),   # F-split / K reduction
            vmem_limit_bytes=_VMEM_LIMIT,
        ),
        cost_estimate=pl.CostEstimate(
            flops=flops, transcendentals=0, bytes_accessed=bytes_accessed
        ),
    )(x, backbone_w, cls_w_padded)

    # One tiny XLA add combines the two partial logit slabs (B*Np f32).
    return logits_parts[0] + logits_parts[1], feats


# ----------------------------------------------------------------------------
# Network: backbone stub + per-task classifier heads (Linear, bias=False)
# ----------------------------------------------------------------------------
class Network:
    def __init__(self, in_dim, init_cls_num, inc_cls_num, task_num, key):
        k_bb, k_cls = jax.random.split(key)

        self.in_dim = in_dim
        # Pad the flattened-input contraction dim so tiling divides evenly and
        # layouts stay unmasked even for odd in_dim.
        if in_dim <= 2048:
            self.k_pad = _round_up(in_dim, 256)
        else:
            self.k_pad = _round_up(in_dim, 1024)

        # Backbone stub weight (f32 master copy kept for reference checks).
        bb = jax.random.normal(k_bb, (in_dim, FEAT_DIM), jnp.float32) * 0.02
        self.backbone_w = bb
        bb_pad = jnp.zeros((self.k_pad, FEAT_DIM), jnp.float32).at[:in_dim, :].set(bb)
        self.backbone_w_bf16 = bb_pad.astype(jnp.bfloat16)

        # Classifier heads: Linear(2048, init_cls) + (task_num-1) x Linear(2048, inc_cls),
        # bias=False.  Fused into ONE [2048, Np] slab zero-padded to a multiple
        # of 256 lanes -> unmasked lane-dense stores, full MXU tiles on v6e/v7x.
        self.cls_sizes = [init_cls_num] + [inc_cls_num] * (task_num - 1)
        cls_keys = jax.random.split(k_cls, len(self.cls_sizes))
        self.classifier_ws = [
            jax.random.normal(k, (FEAT_DIM, c), jnp.float32) * 0.02
            for k, c in zip(cls_keys, self.cls_sizes)
        ]
        n_total = sum(self.cls_sizes)
        self.n_pad = _round_up(max(n_total, 1), _N_PAD)
        cat = jnp.concatenate(self.classifier_ws, axis=1)
        cat_pad = (
            jnp.zeros((FEAT_DIM, self.n_pad), jnp.float32).at[:, :n_total].set(cat)
        )
        self.cls_w_bf16 = cat_pad.astype(jnp.bfloat16)

    def _prep_input(self, data_nchw):
        B = data_nchw.shape[0]
        flat = data_nchw.reshape(B, -1)                    # glue: flatten NCHW
        if self.k_pad != self.in_dim:
            flat = jnp.pad(flat, ((0, 0), (0, self.k_pad - self.in_dim)))
        return flat.astype(jnp.bfloat16)                   # bf16 MXU input, f32 accum

    def return_hidden(self, data_nchw):
        _, feats = fused_network_forward(
            self._prep_input(data_nchw), self.backbone_w_bf16, self.cls_w_bf16
        )
        return feats

    def forward(self, data_nchw, compute_input_matrix=False):
        del compute_input_matrix   # TODO(synk): backbone-internal side effect; no-op.
        logits_pad, _ = fused_network_forward(
            self._prep_input(data_nchw), self.backbone_w_bf16, self.cls_w_bf16
        )
        # Cheap wrapper-side split of the fused lane-dense logits slab.
        out, off = [], 0
        for c in self.cls_sizes:
            out.append(logits_pad[:, off:off + c])
            off += c
        return out

    __call__ = forward


if __name__ == "__main__":
    key = jax.random.PRNGKey(0)
    k_data, k_net = jax.random.split(key)

    # Small shapes consistent with the module: NCHW image batch.
    B, C, H, W = 2, 4, 16, 16
    init_cls_num, inc_cls_num, task_num = 8, 8, 3

    data = jax.random.normal(k_data, (B, C, H, W), jnp.float32)

    net = Network(
        in_dim=C * H * W,
        init_cls_num=init_cls_num,
        inc_cls_num=inc_cls_num,
        task_num=task_num,
        key=k_net,
    )

    logits = net(data)
    logits = [jax.block_until_ready(l) for l in logits]

    # Reference check mirroring the kernel's numerics (bf16 inputs, f32 accum).
    flat = data.reshape(B, -1).astype(jnp.bfloat16).astype(jnp.float32)
    bbw = net.backbone_w_bf16.astype(jnp.float32)[: C * H * W]
    feats_ref = jnp.maximum(flat @ bbw, 0.0)
    feats_ref_b = feats_ref.astype(jnp.bfloat16).astype(jnp.float32)
    logits_ref_pad = feats_ref_b @ net.cls_w_bf16.astype(jnp.float32)

    off = 0
    for l, c in zip(logits, net.cls_sizes):
        ref = logits_ref_pad[:, off:off + c]
        off += c
        assert l.shape == ref.shape, (l.shape, ref.shape)
        assert jnp.allclose(l, ref, atol=2e-3, rtol=2e-3), (
            float(jnp.max(jnp.abs(l - ref)))
        )

    # Also check return_hidden (backbone features path).
    feats = jax.block_until_ready(net.return_hidden(data))
    assert jnp.allclose(feats, feats_ref, atol=2e-3, rtol=2e-3)

    print("KERNEL_OK")
</pallas_src>

<mosaic_0001>
module attributes {stable_mosaic.version = 11 : i64} {
  func.func @_fused_net_kernel(%arg0: i32, %arg1: i32, %arg2: memref<2x512xbf16, #tpu.memory_space<vmem>>, %arg3: memref<512x1024xbf16, #tpu.memory_space<vmem>>, %arg4: memref<1024x256xbf16, #tpu.memory_space<vmem>>, %arg5: memref<1x2x256xf32, #tpu.memory_space<vmem>>, %arg6: memref<2x1024xf32, #tpu.memory_space<vmem>>, %arg7: memref<2x1024xf32, #tpu.memory_space<vmem>>) attributes {dimension_semantics = [#tpu.dimension_semantics<parallel>, #tpu.dimension_semantics<arbitrary>], iteration_bounds = array<i64: 2, 2>, scalar_prefetch = 0 : i64, scratch_operands = 1 : i64, tpu.core_type = #tpu.core_type<tc>, window_params = [{transform_indices = @transform_0, window_bounds = array<i64: 2, 512>}, {transform_indices = @transform_1, window_bounds = array<i64: 512, 1024>}, {transform_indices = @transform_2, window_bounds = array<i64: 1024, 256>}, {transform_indices = @transform_3, window_bounds = array<i64: 1, 2, 256>}, {transform_indices = @transform_4, window_bounds = array<i64: 2, 1024>}]} {
    %c0_i32 = arith.constant 0 : i32
    %0 = arith.cmpi eq, %arg1, %c0_i32 : i32
    %1 = arith.extui %0 : i1 to i32
    %c0_i32_0 = arith.constant 0 : i32
    %2 = arith.cmpi ne, %1, %c0_i32_0 : i32
    scf.if %2 {
      %cst_9 = arith.constant 0.000000e+00 : f32
      %12 = vector.broadcast %cst_9 : f32 to vector<2x1024xf32>
      %c0_10 = arith.constant 0 : index
      %c0_11 = arith.constant 0 : index
      %13 = vector.load %arg7[%c0_10, %c0_11] : memref<2x1024xf32, #tpu.memory_space<vmem>>, vector<2x1024xf32>
      tpu.vector_store %arg7[%c0_10, %c0_11], %12 {strides = array<i32>} : memref<2x1024xf32, #tpu.memory_space<vmem>>, vector<2x1024xf32>,
    } else {
    }
    %c0 = arith.constant 0 : index
    %c0_1 = arith.constant 0 : index
    %3 = vector.load %arg7[%c0, %c0_1] : memref<2x1024xf32, #tpu.memory_space<vmem>>, vector<2x1024xf32>
    %c0_2 = arith.constant 0 : index
    %c0_3 = arith.constant 0 : index
    %4 = vector.load %arg2[%c0_2, %c0_3] : memref<2x512xbf16, #tpu.memory_space<vmem>>, vector<2x512xbf16>
    %c0_4 = arith.constant 0 : index
    %c0_5 = arith.constant 0 : index
    %5 = vector.load %arg3[%c0_4, %c0_5] : memref<512x1024xbf16, #tpu.memory_space<vmem>>, vector<512x1024xbf16>
    %cst = arith.constant dense<0.000000e+00> : vector<2x1024xf32>
    %6 = tpu.matmul %4, %5, %cst {dimension_numbers = #tpu.dot_dimension_numbers<[1], [0], [0], [1], [0, 0, 1, 1], [], []>} : vector<2x512xbf16>, vector<512x1024xbf16>, vector<2x1024xf32> -> vector<2x1024xf32>
    %7 = arith.addf %3, %6 : vector<2x1024xf32>
    %c0_6 = arith.constant 0 : index
    %c0_7 = arith.constant 0 : index
    %8 = vector.load %arg7[%c0_6, %c0_7] : memref<2x1024xf32, #tpu.memory_space<vmem>>, vector<2x1024xf32>
    tpu.vector_store %arg7[%c0_6, %c0_7], %7 {strides = array<i32>} : memref<2x1024xf32, #tpu.memory_space<vmem>>, vector<2x1024xf32>,
    %c1_i32 = arith.constant 1 : i32
    %9 = arith.cmpi eq, %arg1, %c1_i32 : i32
    %10 = arith.extui %9 : i1 to i32
    %c0_i32_8 = arith.constant 0 : i32
    %11 = arith.cmpi ne, %10, %c0_i32_8 : i32
    scf.if %11 {
      %c0_9 = arith.constant 0 : index
      %c0_10 = arith.constant 0 : index
      %12 = vector.load %arg7[%c0_9, %c0_10] : memref<2x1024xf32, #tpu.memory_space<vmem>>, vector<2x1024xf32>
      %cst_11 = arith.constant 0.000000e+00 : f32
      %13 = vector.broadcast %cst_11 : f32 to vector<2x1024xf32>
      %14 = arith.maximumf %12, %13 : vector<2x1024xf32>
      %c0_12 = arith.constant 0 : index
      %c0_13 = arith.constant 0 : index
      %15 = vector.load %arg6[%c0_12, %c0_13] : memref<2x1024xf32, #tpu.memory_space<vmem>>, vector<2x1024xf32>
      tpu.vector_store %arg6[%c0_12, %c0_13], %14 {strides = array<i32>} : memref<2x1024xf32, #tpu.memory_space<vmem>>, vector<2x1024xf32>,
      %16 = arith.truncf %14 : vector<2x1024xf32> to vector<2x1024xbf16>
      %c0_14 = arith.constant 0 : index
      %c0_15 = arith.constant 0 : index
      %17 = vector.load %arg4[%c0_14, %c0_15] : memref<1024x256xbf16, #tpu.memory_space<vmem>>, vector<1024x256xbf16>
      %cst_16 = arith.constant dense<0.000000e+00> : vector<2x256xf32>
      %18 = tpu.matmul %16, %17, %cst_16 {dimension_numbers = #tpu.dot_dimension_numbers<[1], [0], [0], [1], [0, 0, 1, 1], [], []>} : vector<2x1024xbf16>, vector<1024x256xbf16>, vector<2x256xf32> -> vector<2x256xf32>
      %19 = vector.shape_cast %18 : vector<2x256xf32> to vector<1x2x256xf32>
      %c0_17 = arith.constant 0 : index
      %c0_18 = arith.constant 0 : index
      %c0_19 = arith.constant 0 : index
      %20 = vector.load %arg5[%c0_17, %c0_18, %c0_19] : memref<1x2x256xf32, #tpu.memory_space<vmem>>, vector<1x2x256xf32>
      tpu.vector_store %arg5[%c0_17, %c0_18, %c0_19], %19 {strides = array<i32>} : memref<1x2x256xf32, #tpu.memory_space<vmem>>, vector<1x2x256xf32>,
    } else {
    }
    return
  }
  func.func @transform_0(%arg0: i32, %arg1: i32) -> (i32, i32) {
    %c0_i32 = arith.constant 0 : i32
    %c0_i32_0 = arith.constant 0 : i32
    return %c0_i32, %arg1 : i32, i32
  }
  func.func @transform_1(%arg0: i32, %arg1: i32) -> (i32, i32) {
    %c0_i32 = arith.constant 0 : i32
    return %arg1, %arg0 : i32, i32
  }
  func.func @transform_2(%arg0: i32, %arg1: i32) -> (i32, i32) {
    %c0_i32 = arith.constant 0 : i32
    %c0_i32_0 = arith.constant 0 : i32
    return %arg0, %c0_i32 : i32, i32
  }
  func.func @transform_3(%arg0: i32, %arg1: i32) -> (i32, i32, i32) {
    %c0_i32 = arith.constant 0 : i32
    %c0_i32_0 = arith.constant 0 : i32
    %c0_i32_1 = arith.constant 0 : i32
    return %arg0, %c0_i32, %c0_i32_0 : i32, i32, i32
  }
  func.func @transform_4(%arg0: i32, %arg1: i32) -> (i32, i32) {
    %c0_i32 = arith.constant 0 : i32
    %c0_i32_0 = arith.constant 0 : i32
    return %c0_i32, %arg0 : i32, i32
  }
}

</mosaic_0001>

<bundles_post_ra>
// kernel: fused_network_forward.1
= control target key start
LH: loop header
LB: loop body
LE: loop exit
PB: predicated region body
PF: predicated region fallthrough
CT: control target
= control target key end

     0   :  { %s5278_s0 = inlined_call_operand.hbm [shape: bf16[2,1024], index: 0, kind: input, shape index: {}]   ;;  %s5279_s1 = inlined_call_operand.hbm [shape: bf16[1024,2048], index: 1, kind: input, shape index: {}]   ;;  %s5280_s2 = inlined_call_operand.hbm [shape: bf16[2048,256], index: 2, kind: input, shape index: {}]   ;;  %s5281_s3 = inlined_call_operand.vmem [shape: f32[2,2,256], index: 3, kind: output, shape index: {0}]   ;;  %s5282_s4 = inlined_call_operand.hbm [shape: f32[2,2048], index: 4, kind: output, shape index: {1}]  }
   0x1   :  { %5293 = sst [smem:[#allocation20_spill]] %s5278_s0 }
   0x2   :  { %5294 = sst [smem:[#allocation21_spill]] %s5279_s1 }
   0x3   :  { %5295 = sst [smem:[#allocation22_spill]] %s5281_s3 }
   0x4   :  { %5296 = sst [smem:[#allocation23_spill]] %s5282_s4 }
   0x5   :  { %10 = vsyncpa [#allocation4], 0 }
   0x6   :  { %12 = vsyncpa [#allocation4 + $0x1], 0 }
   0x7   :  { %13 = vsyncpa [#allocation7], 0 }
   0x8   :  { %15 = vsyncpa [#allocation7 + $0x1], 0 }
   0x9   :  { %16 = vsyncpa [#allocation5], 0 }
   0xa   :  { %18 = vsyncpa [#allocation5 + $0x1], 0  ;;  %s4491_s15 = smov 0   ;;  %s4493_s16 = smov 0  }
   0xb   :  { %s4495_s17 = smov 0   ;;  %s4497_s18 = smov 0  }
   0xc   :  { %s4499_s19 = smov 0   ;;  %s4501_s20 = smov 0  }
   0xd   :  { %s4503_s21 = smov 0   ;;  %s4505_s22 = smov 0  }
   0xe   :  { %s4507_s23 = smov 0   ;;  %s4509_s24 = smov 0  }
   0xf   :  { %s4511_s25 = smov 0   ;;  %s4513_s26 = smov 0  }
  0x10   :  { %s4515_s27 = smov 0   ;;  %s4517_s28 = smov 0  }
  0x11 LB: > { %5297 = sst [smem:[#allocation14_spill]] %s4436_s24  ;;  %p5289_p0 = scmp.eq.s32.totalorder %s4452_s28, 0  ;;  %s4452_s28 = sphi %s4517_s28, %s24_s28   ;;  %s4448_s27 = sphi %s4515_s27, %s5346_s27   ;;  %s4444_s26 = sphi %s4513_s26, %s5333_s26   ;;  %s4440_s25 = sphi %s4511_s25, %s5345_s25   ;;  %s4436_s24 = sphi %s4509_s24, %s5332_s24   ;;  %s4432_s23 = sphi %s4507_s23, %s5344_s23   ;;  %s4428_s22 = sphi %s4505_s22, %s5343_s22   ;;  %s4424_s21 = sphi %s4503_s21, %s5342_s21   ;;  %s4420_s20 = sphi %s4501_s20, %s5341_s20   ;;  %s4416_s19 = sphi %s4499_s19, %s5340_s19   ;;  %s4412_s18 = sphi %s4497_s18, %s5339_s18   ;;  %s4408_s17 = sphi %s4495_s17, %s5338_s17   ;;  %s4404_s16 = sphi %s4493_s16, %s5337_s16   ;;  %s4400_s15 = sphi %s4491_s15, %s5336_s15  }
  0x12   : > { %5298 = sst [smem:[#allocation15_spill]] %s4440_s25  ;;  %p78_p1 = scmp.ne.s32.totalorder %s4420_s20, %s4416_s19 }
  0x13   : > { %5299 = sst [smem:[#allocation16_spill]] %s4444_s26  ;;  %p84_p2 = scmp.ne.s32.totalorder %s4416_s19, %s4412_s18 }
  0x14   : > { %p80_p3 = por %p78_p1, %p5289_p0  ;;  %p5290_p4 = scmp.lt.s32.totalorder %s4452_s28, 4 }
  0x15   : > { %s205_s5 = sand.u32 1, %s4452_s28   ;;  %s207_s6 = sand.u32 1, %s4420_s20  }
  0x16   : > { %s3465_s7 = sshll.u32 %s207_s6, 11  ;;  %s3467_s8 = sshll.u32 %s4448_s27, 3 }
  0x17   : > { %s3875_s9 = sshll.u32 %s4444_s26, 10  ;;  %s209_s10 = scalar_lea.vmem [#allocation6], %s3465_s7 }
  0x18   : > { %s219_s11 = sshll.u32 %s209_s10, 4  ;;  %s216_s12 = sadd.s32 %s3875_s9, %s3467_s8  ;;  %s220_s11 = int_to_ptr.vmem [resolvable:$true] %s219_s11 }
  0x19   : > { %s3469_s13 = sshll.u32 %s216_s12, 6  ;;  %p4577_p5 = pnand %p5290_p4, %p80_p3 }
  0x1a   : > { %s5301_s1 = sld [smem:[#allocation21_spill]]  ;;  %p3474_p6 = scmp.ge.s32.totalorder %s4452_s28, 1 }
  0x1b   : > { %s4585_s24 = scalar_lea.sflag [#allocation7], %s205_s5  ;;  %p4218_p7 = pneg %p4577_p5 }
  0x1c   : > { %s4229_s6 = scalar_lea.vmem %s220_s11, 32768  ;;  %s4454_s7 = smov [#allocation6]  }
  0x1d   : > { %p4230_p8 = scmp.ne.s32.totalorder %s220_s11, %s4229_s6  ;;  %s4234_s8 = sshll.u32 %s4454_s7, 4  ;;  %s4235_s8 = int_to_ptr.vmem [resolvable:$false] %s4234_s8 }
  0x1e   : > { %s4236_s9 = scalar_lea.vmem %s4235_s8, 65536  ;;  %p4237_p11 = scmp.lt.s32.totalorder %s220_s11, %s4235_s8 }
  0x1f   : > { %p4232_p9 = pnand %p4230_p8, %p4218_p7  ;;  %p4238_p12 = scmp.lt.s32.totalorder %s4236_s9, %s4229_s6 }
  0x20   : > { %s218_s4 = scalar_lea.hbm %s5301_s1, %s3469_s13 }
  0x21   : > { %p4233_p10 = pneg %p4232_p9  ;;  %p4239_p13 = por %p4238_p12, %p4237_p11 }
  0x23   : > { %p4240_p1 = pnand %p4239_p13, %p4233_p10 }
  0x25   : > { %4243 = shalt.err (!%p4240_p1)
}
  0x26   : > { %s4455_s29 = smov 1024   ;;  %s4456_s30 = smov 512  }
  0x27   : > { %s4457_s5 = smov 32   ;;  %p249_p3 = scmp.lt.s32.totalorder %s4452_s28, 5 }
  0x28   : > { %3894 = dma.hbm_to_vmem [thread:$0]  (!%p4577_p5), %s218_s4, 32768, %s220_s11, %s4585_s24, %s4455_s29, %s4456_s30, %s4457_s5  }
  0x29   : > { %p4595_p7 = pnand %p3474_p6, %p249_p3  ;;  %s4600_s12 = sadd.s32 4294967295, %s4452_s28  }
  0x2a   : > { %s33_s13 = sadd.s32 1, %s4444_s26  ;;  %s43_s6 = sadd.s32 1, %s4432_s23 }
  0x2b   : > { %p34_p8 = scmp.ge.s32.totalorder %s33_s13, 2  ;;  %p50_p5 = scmp.ne.s32.totalorder %s4432_s23, %s4428_s22 }
  0x2c   : > { %p56_p9 = scmp.ne.s32.totalorder %s4428_s22, %s4424_s21  ;;  %s5304_s4 = sadd.s32 1, %s4448_s27 }
  0x2d   : > { %s5348_s13 = smov (%p34_p8, %s33_s13), 0  ;;  %s5350_s4 = smov (!%p34_p8, %s5304_s4), %s4448_s27 }
  0x2e   : > { %5303 = sst [smem:[#allocation17_spill]] %s5348_s13  ;;  %s40_s11 = ssub.s32 %s4444_s26, %s5348_s13 }
  0x2f   : > { %p4617_p6 = por %p5289_p0, %p50_p5  ;;  %p38_p10 = scmp.ge.s32.totalorder %s5350_s4, 2 }
  0x30   : > { %p41_p11 = scmp.eq.s32.totalorder %s40_s11, 0  ;;  %p5288_p12 = scmp.eq.s32.totalorder %s4600_s12, 0 }
  0x31   : > { %s5352_s4 = smov (%p38_p10, %s5350_s4), 0  ;;  %s186_s30 = sand.u32 1, %s4432_s23  }
  0x32   : > { %5306 = sst [smem:[#allocation18_spill]] %s5352_s4  ;;  %p4630_p1 = por %p5288_p12, %p56_p9 }
  0x33   : > { %s4626_s21 = scalar_select %p41_p11, %s4432_s23, %s43_s6  }
  0x34   : > { %s4636_s8 = ssub.s32 %s4448_s27, %s5352_s4  ;;  %p4644_p3 = por %p84_p2, %p5288_p12 }
  0x35   : > { %5307 = sst [smem:[#allocation19_spill]] %s4626_s21  ;;  %s68_s9 = sor.u32 %s4636_s8, %s40_s11 }
  0x36   : > { %p69_p8 = scmp.eq.s32.totalorder %s68_s9, 0  ;;  %p95_p5 = scmp.eq.s32.totalorder %s4636_s8, 0 }
  0x37   : > { %s3874_s5 = sshll.u32 %s4444_s26, 6  ;;  %s5310_s6 = sadd.s32 1, %s4420_s20 }
  0x38   : > { %s4654_s1 = scalar_select %p69_p8, %s4420_s20, %s5310_s6  }
  0x39   : > { %s3462_s13 = sshll.u32 %s186_s30, 2  ;;  %s5311_s0 = sld [smem:[#allocation20_spill]] }
  0x3a   : > { %s190_s25 = scalar_lea.vmem [#allocation3], %s3462_s13  ;;  %p4663_p2 = pnand %p5290_p4, %p4617_p6 }
  0x3b   : > { %s198_s11 = sshll.u32 %s190_s25, 4  ;;  %s187_s9 = scalar_lea.sflag [#allocation4], %s186_s30  ;;  %s199_s11 = int_to_ptr.vmem [resolvable:$true] %s198_s11 }
  0x3c   : > { %p4246_p9 = pneg %p4663_p2  ;;  %s4257_s6 = scalar_lea.vmem %s199_s11, 64 }
  0x3d   : > { %p4258_p10 = scmp.ne.s32.totalorder %s199_s11, %s4257_s6  ;;  %s4458_s26 = smov [#allocation3]  }
  0x3e   : > { %s4262_s4 = sshll.u32 %s4458_s26, 4  ;;  %s4263_s4 = int_to_ptr.vmem [resolvable:$false] %s4262_s4 }
  0x3f   : > { %s196_s3 = scalar_lea.hbm %s5311_s0, %s3874_s5  ;;  %p4260_p11 = pnand %p4258_p10, %p4246_p9 }
  0x40   : > { %s4264_s13 = scalar_lea.vmem %s4263_s4, 128  ;;  %p4265_p13 = scmp.lt.s32.totalorder %s199_s11, %s4263_s4 }
  0x41   : > { %p4261_p8 = pneg %p4260_p11  ;;  %p4266_p12 = scmp.lt.s32.totalorder %s4264_s13, %s4257_s6 }
  0x43   : > { %p4267_p0 = por %p4266_p12, %p4265_p13 }
  0x45   : > { %p4268_p6 = pnand %p4267_p0, %p4261_p8 }
  0x47   : > { %4271 = shalt.err (!%p4268_p6)
}
  0x48   : > { %3891 = dma.hbm_to_vmem [thread:$0]  (!%p4663_p2), %s196_s3, 64, %s199_s11, %s187_s9  }
  0x49   : > { %s3459_s25 = sadd.s32 4294967294, %s4452_s28   ;;  %s97_s26 = sadd.s32 1, %s4408_s17 }
  0x4a   : > { %s4676_s14 = scalar_select %p95_p5, %s4408_s17, %s97_s26  }
  0x4b   : > { %p104_p0 = scmp.ne.s32.totalorder %s4408_s17, %s4404_s16  ;;  %p110_p12 = scmp.ne.s32.totalorder %s4404_s16, %s4400_s15 }
  0x4c   : > { %p166_p13 = scmp.eq.s32.totalorder %s3459_s25, 3  ;;  %s231_s21 = sand.u32 1, %s4408_s17  }
  0x4d   : > { %p5313_p9 = scmp.eq.s32.totalorder %s4452_s28, 0  ;;  %p5314_p11 = scmp.eq.s32.totalorder %s4600_s12, 0 }
  0x4e   : > { %p5316_p6 = scmp.eq.s32.totalorder %s4600_s12, 3  ;;  %p4697_p2 = por %p166_p13, %p110_p12 }
  0x4f   : > { %p106_p10 = por %p104_p0, %p5313_p9  ;;  %p4687_p8 = por %p110_p12, %p5314_p11 }
  0x50   : > { %p4693_p4 = por %p5316_p6, %p104_p0  ;;  %s3470_s5 = sshll.u32 %s231_s21, 10 }
  0x51   : > { %s5315_s30 = scalar_select %p4687_p8, 1, 0 }
  0x52   : > { %s5317_s3 = scalar_select %p4693_p4, 1, 0 }
  0x53   : > { %s5318_s8 = scalar_select %p4697_p2, 1, 0 }
  0x54   : > { %s3877_s11 = sshll.u32 %s4448_s27, 14  ;;  %s233_s4 = scalar_lea.vmem [#allocation8], %s3470_s5 }
  0x55   : > { %s240_s6 = scalar_lea.hbm %s5280_s2, %s3877_s11  ;;  %s241_s13 = sshll.u32 %s233_s4, 4  ;;  %s242_s13 = int_to_ptr.vmem [resolvable:$true] %s241_s13 }
  0x56   : > { %p5319_p5 = scmp.lt.s32.totalorder %s4452_s28, 4  ;;  %s4285_s26 = scalar_lea.vmem %s242_s13, 16384 }
  0x57   : > { %p4286_p12 = scmp.ne.s32.totalorder %s242_s13, %s4285_s26  ;;  %s4459_s21 = smov [#allocation8]  }
  0x58   : > { %p4707_p9 = pnand %p5319_p5, %p106_p10  ;;  %s4290_s0 = sshll.u32 %s4459_s21, 4  ;;  %s4291_s0 = int_to_ptr.vmem [resolvable:$false] %s4290_s0 }
  0x59   : > { %s4292_s18 = scalar_lea.vmem %s4291_s0, 32768  ;;  %p4293_p6 = scmp.lt.s32.totalorder %s242_s13, %s4291_s0 }
  0x5a   : > { %p4274_p0 = pneg %p4707_p9  ;;  %p4294_p2 = scmp.lt.s32.totalorder %s4292_s18, %s4285_s26 }
  0x5c   : > { %p4288_p13 = pnand %p4286_p12, %p4274_p0  ;;  %p4295_p4 = por %p4294_p2, %p4293_p6 }
  0x5e   : > { %p4289_p11 = pneg %p4288_p13 }
  0x60   : > { %p4296_p8 = pnand %p4295_p4, %p4289_p11 }
  0x62   : > { %4299 = shalt.err (!%p4296_p8)
}
  0x63   : > { %s4460_s5 = smov 128   ;;  %s4461_s11 = smov 8  }
  0x64   : > { %3897 = dma.hbm_to_vmem [thread:$0]  (!%p4707_p9), %s240_s6, 16384, %s242_s13, %s4585_s24, %s4460_s5, %s4460_s5, %s4461_s11  }
  0x65   : > { %253 = sbr.rel (%p4595_p7) target bundleno = 957 (0x3bd), region = 32  ;;  %s255_s9 = sand.u32 (!%p4595_p7), 1, %s4428_s22  }
  0x66   : > { %s4719_s4 = sshll.u32 (!%p4595_p7), %s255_s9, 2  ;;  %s256_s0 = scalar_lea.sflag (!%p4595_p7), [#allocation4], %s255_s9 }
  0x67   : > { %s259_s26 = scalar_lea.vmem (!%p4595_p7), [#allocation3], %s4719_s4 }
  0x6a   : > { %4383 = dma.done.wait (%p4630_p1), %s256_s0, 64  }
  0x6b   : > { %4385 = vsyncadd (%p4630_p1), %s256_s0, 4294967232  ;;  %s264_s24 = sand.u32 1, %s4600_s12   ;;  %s266_s6 = sand.u32 1, %s4416_s19  }
  0x6c   : > { %s3476_s10 = sshll.u32 %s266_s6, 11  ;;  %s265_s13 = scalar_lea.sflag [#allocation7], %s264_s24 }
  0x6d   : > { %s4728_s25 = scalar_lea.vmem [#allocation6], %s3476_s10 }
  0x6e   : > { %4387 = dma.done.wait (%p4644_p3), %s265_s13, 32768  }
  0x6f   : > { %4389 = vsyncadd (%p4644_p3), %s265_s13, 4294934528  ;;  %s4735_s21 = sand.u32 1, %s4404_s16   ;;  %p5321_p4 = scmp.ne.s32.totalorder %s5315_s30, 0 }
  0x70   : > { %s3477_s7 = sshll.u32 %s4735_s21, 10 }
  0x71   : > { %s4738_s18 = scalar_lea.vmem [#allocation8], %s3477_s7 }
  0x72   : > { %4391 = dma.done.wait (%p5321_p4), %s265_s13, 16384  }
  0x73   : > { %4393 = vsyncadd (%p5321_p4), %s265_s13, 4294950912  ;;  %s5322_s12 = sld [smem:[#allocation15_spill]]  ;;  %s3478_s5 = sshll.u32 %s4735_s21, 4 }
  0x74   : > { %s5323_s0 = sld [smem:[#allocation22_spill]]  ;;  %s4752_s6 = scalar_lea.vmem [#allocation9], %s3478_s5 }
  0x75   : > { %s5324_s10 = sld [smem:[#allocation14_spill]] }
  0x79   : > { %p321_p7 = scmp.lt.s32.totalorder %s5322_s12, 1 }
  0x7b   : > { %s5354_s12 = smov (!%p321_p7, %s5322_s12), 1  ;;  %p3481_p1 = scmp.ne.s32.totalorder %s5324_s10, 0 }
  0x7c   : > { %s3878_s29 = sshll.u32 %s5354_s12, 2 }
  0x7d   : > { %s4750_s24 = scalar_lea.vmem %s5323_s0, %s3878_s29  ;;  %330 = sbr.rel (%p3481_p1) target bundleno = 132 (0x84), region = 48 }
  0x82   : > { %v4462_v0 = vmov 0.0  }
  0x83   : > { %331 = vst [vmem:[#allocation2] sm:$0xff] %v4462_v0  ;;  %332 = vst [vmem:[#allocation2 + $0x8] sm:$0xff] %v4462_v0 }
  0x84 PF: > { %v392_v1 = vld [vmem:[%s4728_s25 + $0x1c0] sm:$0xff]  ;;  %v4463_v36 = vmov 1966171168   ;;  %v604_v38 = vlaneseq  ;;  %s5325_s30 = sld [smem:[#allocation14_spill]] }
  0x85   : > { %v396_v2 = vld [vmem:[%s4728_s25 + $0x1e0] sm:$0xff]  ;;  %v602_v37 = vunpack.c.l.s4 %v4463_v36  ;;  %v4790_v60 = vld.sshfl [vmem:[%s259_s26] sm:$0x33 pattern:$0x75316420] }
  0x86   : > { %v520_v3 = vld [vmem:[%s4728_s25 + $0x5c0] sm:$0xff]  ;;  %v3540_v4 = vcombine.high %v392_v1, %v396_v2  ;;  %v3539_v6 = vcombine.low %v392_v1, %v396_v2  ;;  %v4779_v48 = vshrl.u32 %v604_v38, 7  ;;  %v600_v0 = vcombine.high %v4790_v60, %v4790_v60 }
  0x87   : > { %v524_v5 = vld [vmem:[%s4728_s25 + $0x5e0] sm:$0xff]  ;;  %v603_v47 = vunpack.c.0.s8 %v602_v37 }
  0x88   : > { %v384_v7 = vld [vmem:[%s4728_s25 + $0x180] sm:$0xff]  ;;  %v3668_v9 = vcombine.high %v520_v3, %v524_v5  ;;  %v3667_v10 = vcombine.low %v520_v3, %v524_v5  ;;  %1901 = vmatprep.subr.bf16.mxu0 %v3540_v4 }
  0x89   : > { %v388_v8 = vld [vmem:[%s4728_s25 + $0x1a0] sm:$0xff]  ;;  %1902 = vmatpush1.bf16.msra.mxu0 %v3539_v6  ;;  %v4786_v57 = vsub.s32 %v603_v47, %v4779_v48 }
  0x8a   : > { %v3532_v11 = vcombine.high %v384_v7, %v388_v8  ;;  %v512_v12 = vld [vmem:[%s4728_s25 + $0x580] sm:$0xff]  ;;  %1942 = vmatprep.subr.bf16.mxu1 %v3668_v9  ;;  %v3531_v19 = vcombine.low %v384_v7, %v388_v8  ;;  %p3739_p3 = scmp.ne.s32.totalorder %s5325_s30, 1 }
  0x8b   : > { %v516_v13 = vld [vmem:[%s4728_s25 + $0x5a0] sm:$0xff]  ;;  %1943 = vmatpush1.bf16.msra.mxu1 %v3667_v10  ;;  %v4799_v4 = vrot.slane %v600_v0, %v4786_v57 }
  0x8c   : > { %v376_v14 = vld [vmem:[%s4728_s25 + $0x140] sm:$0xff]  ;;  %v3660_v15 = vcombine.high %v512_v12, %v516_v13  ;;  %1903 = vmatprep.subr.bf16.mxu0 %v3532_v11  ;;  %v3659_v20 = vcombine.low %v512_v12, %v516_v13 }
  0x8d   : > { %v380_v16 = vld [vmem:[%s4728_s25 + $0x160] sm:$0xff]  ;;  %1904 = vmatpush1.bf16.msra.mxu0 %v3531_v19  ;;  %1933 = vmatprep.mubr.bf16.mxu0 %v4799_v4  ;;  %v4806_v10 = vcombine.high %v4799_v4, %v4799_v4 }
  0x8e   : > { %v504_v17 = vld [vmem:[%s4728_s25 + $0x540] sm:$0xff]  ;;  %v3524_v21 = vcombine.high %v376_v14, %v380_v16  ;;  %1944 = vmatprep.subr.bf16.mxu1 %v3660_v15  ;;  %v3523_v27 = vcombine.low %v376_v14, %v380_v16 }
  0x8f   : > { %v508_v18 = vld [vmem:[%s4728_s25 + $0x560] sm:$0xff]  ;;  %1945 = vmatpush1.bf16.msra.mxu1 %v3659_v20  ;;  %1974 = vmatprep.mubr.bf16.mxu1 %v4806_v10 }
  0x90   : > { %v3652_v22 = vcombine.high %v504_v17, %v508_v18  ;;  %v368_v23 = vld [vmem:[%s4728_s25 + $0x100] sm:$0xff]  ;;  %1905 = vmatprep.subr.bf16.mxu0 %v3524_v21  ;;  %v3651_v28 = vcombine.low %v504_v17, %v508_v18 }
  0x91   : > { %v372_v24 = vld [vmem:[%s4728_s25 + $0x120] sm:$0xff]  ;;  %1906 = vmatpush1.bf16.msra.mxu0 %v3523_v27 }
  0x92   : > { %v496_v25 = vld [vmem:[%s4728_s25 + $0x500] sm:$0xff]  ;;  %v3516_v29 = vcombine.high %v368_v23, %v372_v24  ;;  %1946 = vmatprep.subr.bf16.mxu1 %v3652_v22  ;;  %v3515_v35 = vcombine.low %v368_v23, %v372_v24 }
  0x93   : > { %v500_v26 = vld [vmem:[%s4728_s25 + $0x520] sm:$0xff]  ;;  %1947 = vmatpush1.bf16.msra.mxu1 %v3651_v28 }
  0x94   : > { %v3644_v30 = vcombine.high %v496_v25, %v500_v26  ;;  %v360_v31 = vld [vmem:[%s4728_s25 + $0xc0] sm:$0xff]  ;;  %1907 = vmatprep.subr.bf16.mxu0 %v3516_v29  ;;  %v3643_v39 = vcombine.low %v496_v25, %v500_v26 }
  0x95   : > { %v364_v32 = vld [vmem:[%s4728_s25 + $0xe0] sm:$0xff]  ;;  %1908 = vmatpush1.bf16.msra.mxu0 %v3515_v35 }
  0x96   : > { %v488_v33 = vld [vmem:[%s4728_s25 + $0x4c0] sm:$0xff]  ;;  %v3508_v40 = vcombine.high %v360_v31, %v364_v32  ;;  %1948 = vmatprep.subr.bf16.mxu1 %v3644_v30  ;;  %v3507_v46 = vcombine.low %v360_v31, %v364_v32 }
  0x97   : > { %v492_v34 = vld [vmem:[%s4728_s25 + $0x4e0] sm:$0xff]  ;;  %1949 = vmatpush1.bf16.msra.mxu1 %v3643_v39 }
  0x98   : > { %v3636_v41 = vcombine.high %v488_v33, %v492_v34  ;;  %v352_v42 = vld [vmem:[%s4728_s25 + $0x80] sm:$0xff]  ;;  %1909 = vmatprep.subr.bf16.mxu0 %v3508_v40  ;;  %v3635_v49 = vcombine.low %v488_v33, %v492_v34 }
  0x99   : > { %v356_v43 = vld [vmem:[%s4728_s25 + $0xa0] sm:$0xff]  ;;  %1910 = vmatpush1.bf16.msra.mxu0 %v3507_v46 }
  0x9a   : > { %v480_v44 = vld [vmem:[%s4728_s25 + $0x480] sm:$0xff]  ;;  %v3500_v50 = vcombine.high %v352_v42, %v356_v43  ;;  %1950 = vmatprep.subr.bf16.mxu1 %v3636_v41  ;;  %v3499_v56 = vcombine.low %v352_v42, %v356_v43 }
  0x9b   : > { %v484_v45 = vld [vmem:[%s4728_s25 + $0x4a0] sm:$0xff]  ;;  %1951 = vmatpush1.bf16.msra.mxu1 %v3635_v49 }
  0x9c   : > { %v3628_v51 = vcombine.high %v480_v44, %v484_v45  ;;  %v344_v52 = vld [vmem:[%s4728_s25 + $0x40] sm:$0xff]  ;;  %1911 = vmatprep.subr.bf16.mxu0 %v3500_v50  ;;  %v3627_v58 = vcombine.low %v480_v44, %v484_v45 }
  0x9d   : > { %v348_v53 = vld [vmem:[%s4728_s25 + $0x60] sm:$0xff]  ;;  %1912 = vmatpush1.bf16.msra.mxu0 %v3499_v56 }
  0x9e   : > { %v472_v54 = vld [vmem:[%s4728_s25 + $0x440] sm:$0xff]  ;;  %v3492_v59 = vcombine.high %v344_v52, %v348_v53  ;;  %1952 = vmatprep.subr.bf16.mxu1 %v3628_v51  ;;  %v3491_v3 = vcombine.low %v344_v52, %v348_v53 }
  0x9f   : > { %v476_v55 = vld [vmem:[%s4728_s25 + $0x460] sm:$0xff]  ;;  %1953 = vmatpush1.bf16.msra.mxu1 %v3627_v58 }
  0xa0   : > { %v3620_v61 = vcombine.high %v472_v54, %v476_v55  ;;  %v336_v62 = vld [vmem:[%s4728_s25] sm:$0xff]  ;;  %1913 = vmatprep.subr.bf16.mxu0 %v3492_v59  ;;  %v3619_v5 = vcombine.low %v472_v54, %v476_v55 }
  0xa1   : > { %v340_v63 = vld [vmem:[%s4728_s25 + $0x20] sm:$0xff]  ;;  %1914 = vmatpush1.bf16.msra.mxu0 %v3491_v3 }
  0xa2   : > { %v464_v1 = vld [vmem:[%s4728_s25 + $0x400] sm:$0xff]  ;;  %v3484_v6 = vcombine.high %v336_v62, %v340_v63  ;;  %1954 = vmatprep.subr.bf16.mxu1 %v3620_v61  ;;  %v3483_v13 = vcombine.low %v336_v62, %v340_v63 }
  0xa3   : > { %v468_v2 = vld [vmem:[%s4728_s25 + $0x420] sm:$0xff]  ;;  %1955 = vmatpush1.bf16.msra.mxu1 %v3619_v5 }
  0xa4   : > { %v3612_v7 = vcombine.high %v464_v1, %v468_v2  ;;  %v456_v8 = vld [vmem:[%s4728_s25 + $0x3c0] sm:$0xff]  ;;  %1915 = vmatprep.subr.bf16.mxu0 %v3484_v6  ;;  %v3611_v14 = vcombine.low %v464_v1, %v468_v2 }
  0xa5   : > { %v460_v9 = vld [vmem:[%s4728_s25 + $0x3e0] sm:$0xff]  ;;  %1916 = vmatpush1.bf16.msra.mxu0 %v3483_v13 }
  0xa6   : > { %v584_v11 = vld [vmem:[%s4728_s25 + $0x7c0] sm:$0xff]  ;;  %v3604_v15 = vcombine.high %v456_v8, %v460_v9  ;;  %1956 = vmatprep.subr.bf16.mxu1 %v3612_v7  ;;  %v3603_v21 = vcombine.low %v456_v8, %v460_v9 }
  0xa7   : > { %v588_v12 = vld [vmem:[%s4728_s25 + $0x7e0] sm:$0xff]  ;;  %1957 = vmatpush1.bf16.msra.mxu1 %v3611_v14  ;;  %v393_v14 = vld [vmem:[%s4728_s25 + $0x1c8] sm:$0xff] }
  0xa8   : > { %v3732_v16 = vcombine.high %v584_v11, %v588_v12  ;;  %v448_v17 = vld [vmem:[%s4728_s25 + $0x380] sm:$0xff]  ;;  %1917 = vmatprep.subr.bf16.mxu0 %v3604_v15  ;;  %v3731_v22 = vcombine.low %v584_v11, %v588_v12  ;;  %v397_v15 = vld [vmem:[%s4728_s25 + $0x1e8] sm:$0xff] }
  0xa9   : > { %v452_v18 = vld [vmem:[%s4728_s25 + $0x3a0] sm:$0xff]  ;;  %1918 = vmatpush2.bf16.msra.mxu0 %v3603_v21  ;;  %v3542_v21 = vcombine.high %v393_v14, %v397_v15 }
  0xaa   : > { %v576_v19 = vld [vmem:[%s4728_s25 + $0x780] sm:$0xff]  ;;  %v3596_v23 = vcombine.high %v448_v17, %v452_v18  ;;  %1958 = vmatprep.subr.bf16.mxu1 %v3732_v16  ;;  %v3595_v29 = vcombine.low %v448_v17, %v452_v18  ;;  %v521_v16 = vld [vmem:[%s4728_s25 + $0x5c8] sm:$0xff] }
  0xab   : > { %v580_v20 = vld [vmem:[%s4728_s25 + $0x7a0] sm:$0xff]  ;;  %1959 = vmatpush2.bf16.msra.mxu1 %v3731_v22  ;;  %v525_v17 = vld [vmem:[%s4728_s25 + $0x5e8] sm:$0xff] }
  0xac   : > { %v3724_v24 = vcombine.high %v576_v19, %v580_v20  ;;  %v440_v25 = vld [vmem:[%s4728_s25 + $0x340] sm:$0xff]  ;;  %1919 = vmatprep.subr.bf16.mxu0 %v3596_v23  ;;  %v3723_v30 = vcombine.low %v576_v19, %v580_v20  ;;  %v4845_v19 = vrot.slane %v4790_v60, %v4786_v57  ;;  %v3670_v22 = vcombine.high %v521_v16, %v525_v17  ;;  %v385_v23 = vld [vmem:[%s4728_s25 + $0x188] sm:$0xff] }
  0xad   : > { %v444_v26 = vld [vmem:[%s4728_s25 + $0x360] sm:$0xff]  ;;  %1920 = vmatpush2.bf16.msra.mxu0 %v3595_v29  ;;  %v3541_v57 = vcombine.low %v393_v14, %v397_v15  ;;  %v3669_v60 = vcombine.low %v521_v16, %v525_v17  ;;  %v469_v14 = vld [vmem:[%s4728_s25 + $0x428] sm:$0xff] }
  0xae   : > { %v568_v27 = vld [vmem:[%s4728_s25 + $0x740] sm:$0xff]  ;;  %v3588_v31 = vcombine.high %v440_v25, %v444_v26  ;;  %1960 = vmatprep.subr.bf16.mxu1 %v3724_v24  ;;  %v3587_v37 = vcombine.low %v440_v25, %v444_v26  ;;  %v389_v24 = vld [vmem:[%s4728_s25 + $0x1a8] sm:$0xff] }
  0xaf   : > { %v572_v28 = vld [vmem:[%s4728_s25 + $0x760] sm:$0xff]  ;;  %1961 = vmatpush2.bf16.msra.mxu1 %v3723_v30  ;;  %v513_v25 = vld [vmem:[%s4728_s25 + $0x588] sm:$0xff] }
  0xb0   : > { %v3716_v32 = vcombine.high %v568_v27, %v572_v28  ;;  %v432_v33 = vld [vmem:[%s4728_s25 + $0x300] sm:$0xff]  ;;  %1921 = vmatprep.subr.bf16.mxu0 %v3588_v31  ;;  %v3715_v38 = vcombine.low %v568_v27, %v572_v28  ;;  %v517_v26 = vld [vmem:[%s4728_s25 + $0x5a8] sm:$0xff]  ;;  %v4853_v27 = vcombine.high %v4845_v19, %v4845_v19  ;;  %v3534_v28 = vcombine.high %v385_v23, %v389_v24 }
  0xb1   : > { %v436_v34 = vld [vmem:[%s4728_s25 + $0x320] sm:$0xff]  ;;  %1922 = vmatpush2.bf16.msra.mxu0 %v3587_v37  ;;  %v3662_v29 = vcombine.high %v513_v25, %v517_v26  ;;  %v377_v30 = vld [vmem:[%s4728_s25 + $0x148] sm:$0xff] }
  0xb2   : > { %v560_v35 = vld [vmem:[%s4728_s25 + $0x700] sm:$0xff]  ;;  %v3580_v39 = vcombine.high %v432_v33, %v436_v34  ;;  %1962 = vmatprep.subr.bf16.mxu1 %v3716_v32  ;;  %v3579_v45 = vcombine.low %v432_v33, %v436_v34  ;;  %v381_v31 = vld [vmem:[%s4728_s25 + $0x168] sm:$0xff]  ;;  %v3533_v34 = vcombine.low %v385_v23, %v389_v24 }
  0xb3   : > { %v564_v36 = vld [vmem:[%s4728_s25 + $0x720] sm:$0xff]  ;;  %1963 = vmatpush2.bf16.msra.mxu1 %v3715_v38  ;;  %v505_v32 = vld [vmem:[%s4728_s25 + $0x548] sm:$0xff] }
  0xb4   : > { %v3708_v40 = vcombine.high %v560_v35, %v564_v36  ;;  %v424_v41 = vld [vmem:[%s4728_s25 + $0x2c0] sm:$0xff]  ;;  %1923 = vmatprep.subr.bf16.mxu0 %v3580_v39  ;;  %v3707_v46 = vcombine.low %v560_v35, %v564_v36  ;;  %v509_v33 = vld [vmem:[%s4728_s25 + $0x568] sm:$0xff]  ;;  %v3661_v35 = vcombine.low %v513_v25, %v517_v26  ;;  %v3526_v36 = vcombine.high %v377_v30, %v381_v31 }
  0xb5   : > { %v428_v42 = vld [vmem:[%s4728_s25 + $0x2e0] sm:$0xff]  ;;  %1924 = vmatpush2.bf16.msra.mxu0 %v3579_v45  ;;  %v3654_v37 = vcombine.high %v505_v32, %v509_v33  ;;  %v369_v38 = vld [vmem:[%s4728_s25 + $0x108] sm:$0xff] }
  0xb6   : > { %v552_v43 = vld [vmem:[%s4728_s25 + $0x6c0] sm:$0xff]  ;;  %v3572_v47 = vcombine.high %v424_v41, %v428_v42  ;;  %1964 = vmatprep.subr.bf16.mxu1 %v3708_v40  ;;  %v3571_v54 = vcombine.low %v424_v41, %v428_v42  ;;  %v373_v39 = vld [vmem:[%s4728_s25 + $0x128] sm:$0xff]  ;;  %v3525_v42 = vcombine.low %v377_v30, %v381_v31 }
  0xb7   : > { %v556_v44 = vld [vmem:[%s4728_s25 + $0x6e0] sm:$0xff]  ;;  %1965 = vmatpush2.bf16.msra.mxu1 %v3707_v46  ;;  %v497_v40 = vld [vmem:[%s4728_s25 + $0x508] sm:$0xff] }
  0xb8   : > { %v3700_v49 = vcombine.high %v552_v43, %v556_v44  ;;  %v416_v50 = vld [vmem:[%s4728_s25 + $0x280] sm:$0xff]  ;;  %1925 = vmatprep.subr.bf16.mxu0 %v3572_v47  ;;  %v3699_v55 = vcombine.low %v552_v43, %v556_v44  ;;  %v501_v41 = vld [vmem:[%s4728_s25 + $0x528] sm:$0xff]  ;;  %v3653_v43 = vcombine.low %v505_v32, %v509_v33  ;;  %v3518_v44 = vcombine.high %v369_v38, %v373_v39 }
  0xb9   : > { %v420_v51 = vld [vmem:[%s4728_s25 + $0x2a0] sm:$0xff]  ;;  %1926 = vmatpush2.bf16.msra.mxu0 %v3571_v54  ;;  %v3646_v45 = vcombine.high %v497_v40, %v501_v41  ;;  %v361_v46 = vld [vmem:[%s4728_s25 + $0xc8] sm:$0xff] }
  0xba   : > { %v544_v52 = vld [vmem:[%s4728_s25 + $0x680] sm:$0xff]  ;;  %v3564_v56 = vcombine.high %v416_v50, %v420_v51  ;;  %1966 = vmatprep.subr.bf16.mxu1 %v3700_v49  ;;  %v3563_v0 = vcombine.low %v416_v50, %v420_v51  ;;  %v365_v47 = vld [vmem:[%s4728_s25 + $0xe8] sm:$0xff]  ;;  %v3517_v51 = vcombine.low %v369_v38, %v373_v39 }
  0xbb   : > { %v548_v53 = vld [vmem:[%s4728_s25 + $0x6a0] sm:$0xff]  ;;  %1967 = vmatpush2.bf16.msra.mxu1 %v3699_v55  ;;  %v489_v49 = vld [vmem:[%s4728_s25 + $0x4c8] sm:$0xff] }
  0xbc   : > { %v3692_v58 = vcombine.high %v544_v52, %v548_v53  ;;  %v408_v59 = vld [vmem:[%s4728_s25 + $0x240] sm:$0xff]  ;;  %1927 = vmatprep.subr.bf16.mxu0 %v3564_v56  ;;  %v3691_v1 = vcombine.low %v544_v52, %v548_v53  ;;  %v493_v50 = vld [vmem:[%s4728_s25 + $0x4e8] sm:$0xff]  ;;  %v3645_v52 = vcombine.low %v497_v40, %v501_v41  ;;  %v3510_v53 = vcombine.high %v361_v46, %v365_v47 }
  0xbd   : > { %v412_v61 = vld [vmem:[%s4728_s25 + $0x260] sm:$0xff]  ;;  %1928 = vmatpush2.bf16.msra.mxu0 %v3563_v0  ;;  %v3638_v54 = vcombine.high %v489_v49, %v493_v50  ;;  %v353_v55 = vld [vmem:[%s4728_s25 + $0x88] sm:$0xff] }
  0xbe   : > { %v536_v62 = vld [vmem:[%s4728_s25 + $0x640] sm:$0xff]  ;;  %v3556_v2 = vcombine.high %v408_v59, %v412_v61  ;;  %1968 = vmatprep.subr.bf16.mxu1 %v3692_v58  ;;  %v3555_v9 = vcombine.low %v408_v59, %v412_v61  ;;  %v357_v56 = vld [vmem:[%s4728_s25 + $0xa8] sm:$0xff]  ;;  %v3509_v61 = vcombine.low %v361_v46, %v365_v47 }
  0xbf   : > { %v540_v63 = vld [vmem:[%s4728_s25 + $0x660] sm:$0xff]  ;;  %1969 = vmatpush2.bf16.msra.mxu1 %v3691_v1  ;;  %v481_v58 = vld [vmem:[%s4728_s25 + $0x488] sm:$0xff] }
  0xc0   : > { %v3684_v3 = vcombine.high %v536_v62, %v540_v63  ;;  %v400_v5 = vld [vmem:[%s4728_s25 + $0x200] sm:$0xff]  ;;  %1929 = vmatprep.subr.bf16.mxu0 %v3556_v2  ;;  %v3683_v11 = vcombine.low %v536_v62, %v540_v63  ;;  %v485_v59 = vld [vmem:[%s4728_s25 + $0x4a8] sm:$0xff]  ;;  %v3637_v62 = vcombine.low %v489_v49, %v493_v50  ;;  %v3502_v63 = vcombine.high %v353_v55, %v357_v56 }
  0xc1   : > { %v404_v6 = vld [vmem:[%s4728_s25 + $0x220] sm:$0xff]  ;;  %1930 = vmatpush2.bf16.msra.mxu0 %v3555_v9  ;;  %v3630_v0 = vcombine.high %v481_v58, %v485_v59  ;;  %v345_v1 = vld [vmem:[%s4728_s25 + $0x48] sm:$0xff] }
  0xc2   : > { %v528_v7 = vld [vmem:[%s4728_s25 + $0x600] sm:$0xff]  ;;  %v3548_v12 = vcombine.high %v400_v5, %v404_v6  ;;  %1970 = vmatprep.subr.bf16.mxu1 %v3684_v3  ;;  %v3547_v18 = vcombine.low %v400_v5, %v404_v6  ;;  %v349_v2 = vld [vmem:[%s4728_s25 + $0x68] sm:$0xff]  ;;  %v3501_v6 = vcombine.low %v353_v55, %v357_v56 }
  0xc3   : > { %v532_v8 = vld [vmem:[%s4728_s25 + $0x620] sm:$0xff]  ;;  %1971 = vmatpush2.bf16.msra.mxu1 %v3683_v11  ;;  %v473_v3 = vld [vmem:[%s4728_s25 + $0x448] sm:$0xff]  ;;  %v3493_v15 = vcombine.low %v345_v1, %v349_v2 }
  0xc4   : > { %v3676_v13 = vcombine.high %v528_v7, %v532_v8  ;;  %1931 = vmatprep.subr.bf16.mxu0 %v3548_v12  ;;  %v3675_v20 = vcombine.low %v528_v7, %v532_v8  ;;  %v477_v5 = vld [vmem:[%s4728_s25 + $0x468] sm:$0xff]  ;;  %v3629_v7 = vcombine.low %v481_v58, %v485_v59  ;;  %v3494_v8 = vcombine.high %v345_v1, %v349_v2 }
  0xc5   : > { %1932 = vmatpush2.bf16.msra.mxu0 %v3547_v18  ;;  %v3622_v9 = vcombine.high %v473_v3, %v477_v5  ;;  %v337_v11 = vld [vmem:[%s4728_s25 + $0x8] sm:$0xff]  ;;  %v3621_v16 = vcombine.low %v473_v3, %v477_v5 }
  0xc6   : > { %1972 = vmatprep.subr.bf16.mxu1 %v3676_v13  ;;  %1983 = vmatprep.subr.bf16.mxu0 %v3542_v21  ;;  %v341_v12 = vld [vmem:[%s4728_s25 + $0x28] sm:$0xff] }
  0xc7   : > { %1973 = vmatpush2.bf16.msra.mxu1 %v3675_v20  ;;  %v465_v13 = vld [vmem:[%s4728_s25 + $0x408] sm:$0xff]  ;;  %v3486_v17 = vcombine.high %v337_v11, %v341_v12  ;;  %v3485_v24 = vcombine.low %v337_v11, %v341_v12 }
  0xc8   : > { %2024 = vmatprep.subr.bf16.mxu1 %v3670_v22  ;;  %1934 = vmatmul.mubr.bf16.vlgmr.msra.gmra.mxu0 %v4845_v19  ;;  %v3614_v18 = vcombine.high %v465_v13, %v469_v14  ;;  %v457_v20 = vld [vmem:[%s4728_s25 + $0x3c8] sm:$0xff]  ;;  %v3613_v25 = vcombine.low %v465_v13, %v469_v14 }
  0xc9   : > { %1984 = vmatpush1.bf16.msra.mxu0 %v3541_v57  ;;  %2015 = vmatprep.mubr.bf16.mxu0 %v4799_v4  ;;  %v461_v21 = vld [vmem:[%s4728_s25 + $0x3e8] sm:$0xff] }
  0xca   : > { %1975 = vmatmul.mubr.bf16.vlgmr.msra.gmra.mxu1 %v4853_v27  ;;  %1985 = vmatprep.subr.bf16.mxu0 %v3534_v28  ;;  %v585_v22 = vld [vmem:[%s4728_s25 + $0x7c8] sm:$0xff]  ;;  %v3606_v26 = vcombine.high %v457_v20, %v461_v21  ;;  %v3605_v31 = vcombine.low %v457_v20, %v461_v21 }
  0xcb   : > { %2025 = vmatpush1.bf16.msra.mxu1 %v3669_v60  ;;  %2056 = vmatprep.mubr.bf16.mxu1 %v4806_v10  ;;  %v589_v23 = vld [vmem:[%s4728_s25 + $0x7e8] sm:$0xff] }
  0xcc   : > { %2026 = vmatprep.subr.bf16.mxu1 %v3662_v29  ;;  %v3734_v57 = vcombine.high %v585_v22, %v589_v23  ;;  %v449_v60 = vld [vmem:[%s4728_s25 + $0x388] sm:$0xff]  ;;  %v3733_v32 = vcombine.low %v585_v22, %v589_v23 }
  0xcd   : > { %1986 = vmatpush1.bf16.msra.mxu0 %v3533_v34  ;;  %v453_v28 = vld [vmem:[%s4728_s25 + $0x3a8] sm:$0xff] }
  0xce   : > { %1987 = vmatprep.subr.bf16.mxu0 %v3526_v36  ;;  %v577_v29 = vld [vmem:[%s4728_s25 + $0x788] sm:$0xff]  ;;  %v3598_v33 = vcombine.high %v449_v60, %v453_v28  ;;  %v3597_v39 = vcombine.low %v449_v60, %v453_v28  ;;  %v526_v60 = vld [vmem:[%s4728_s25 + $0x5f0] sm:$0xff] }
  0xcf   : > { %2027 = vmatpush1.bf16.msra.mxu1 %v3661_v35  ;;  %v581_v30 = vld [vmem:[%s4728_s25 + $0x7a8] sm:$0xff] }
  0xd0   : > { %2028 = vmatprep.subr.bf16.mxu1 %v3654_v37  ;;  %v3726_v34 = vcombine.high %v577_v29, %v581_v30  ;;  %v441_v35 = vld [vmem:[%s4728_s25 + $0x348] sm:$0xff]  ;;  %v3725_v40 = vcombine.low %v577_v29, %v581_v30 }
  0xd1   : > { %1988 = vmatpush1.bf16.msra.mxu0 %v3525_v42  ;;  %v445_v36 = vld [vmem:[%s4728_s25 + $0x368] sm:$0xff] }
  0xd2   : > { %1989 = vmatprep.subr.bf16.mxu0 %v3518_v44  ;;  %v569_v37 = vld [vmem:[%s4728_s25 + $0x748] sm:$0xff]  ;;  %v3590_v41 = vcombine.high %v441_v35, %v445_v36  ;;  %v3589_v47 = vcombine.low %v441_v35, %v445_v36  ;;  %v518_v35 = vld [vmem:[%s4728_s25 + $0x5b0] sm:$0xff] }
  0xd3   : > { %2029 = vmatpush1.bf16.msra.mxu1 %v3653_v43  ;;  %v573_v38 = vld [vmem:[%s4728_s25 + $0x768] sm:$0xff] }
  0xd4   : > { %2030 = vmatprep.subr.bf16.mxu1 %v3646_v45  ;;  %v3718_v42 = vcombine.high %v569_v37, %v573_v38  ;;  %v433_v43 = vld [vmem:[%s4728_s25 + $0x308] sm:$0xff]  ;;  %v3717_v49 = vcombine.low %v569_v37, %v573_v38 }
  0xd5   : > { %1990 = vmatpush1.bf16.msra.mxu0 %v3517_v51  ;;  %v437_v44 = vld [vmem:[%s4728_s25 + $0x328] sm:$0xff] }
  0xd6   : > { %1991 = vmatprep.subr.bf16.mxu0 %v3510_v53  ;;  %v561_v45 = vld [vmem:[%s4728_s25 + $0x708] sm:$0xff]  ;;  %v3582_v50 = vcombine.high %v433_v43, %v437_v44  ;;  %v3581_v56 = vcombine.low %v433_v43, %v437_v44  ;;  %v510_v43 = vld [vmem:[%s4728_s25 + $0x570] sm:$0xff] }
  0xd7   : > { %2031 = vmatpush1.bf16.msra.mxu1 %v3645_v52  ;;  %v565_v46 = vld [vmem:[%s4728_s25 + $0x728] sm:$0xff] }
  0xd8   : > { %2032 = vmatprep.subr.bf16.mxu1 %v3638_v54  ;;  %v3710_v51 = vcombine.high %v561_v45, %v565_v46  ;;  %v425_v52 = vld [vmem:[%s4728_s25 + $0x2c8] sm:$0xff]  ;;  %v3709_v58 = vcombine.low %v561_v45, %v565_v46 }
  0xd9   : > { %1992 = vmatpush1.bf16.msra.mxu0 %v3509_v61  ;;  %v429_v53 = vld [vmem:[%s4728_s25 + $0x2e8] sm:$0xff] }
  0xda   : > { %1993 = vmatprep.subr.bf16.mxu0 %v3502_v63  ;;  %v553_v54 = vld [vmem:[%s4728_s25 + $0x6c8] sm:$0xff]  ;;  %v3574_v59 = vcombine.high %v425_v52, %v429_v53  ;;  %v3573_v2 = vcombine.low %v425_v52, %v429_v53  ;;  %v502_v52 = vld [vmem:[%s4728_s25 + $0x530] sm:$0xff] }
  0xdb   : > { %2033 = vmatpush1.bf16.msra.mxu1 %v3637_v62  ;;  %v557_v55 = vld [vmem:[%s4728_s25 + $0x6e8] sm:$0xff] }
  0xdc   : > { %2034 = vmatprep.subr.bf16.mxu1 %v3630_v0  ;;  %v3702_v61 = vcombine.high %v553_v54, %v557_v55  ;;  %v417_v62 = vld [vmem:[%s4728_s25 + $0x288] sm:$0xff]  ;;  %v3701_v3 = vcombine.low %v553_v54, %v557_v55 }
  0xdd   : > { %1994 = vmatpush1.bf16.msra.mxu0 %v3501_v6  ;;  %v421_v63 = vld [vmem:[%s4728_s25 + $0x2a8] sm:$0xff] }
  0xde   : > { %1995 = vmatprep.subr.bf16.mxu0 %v3494_v8  ;;  %v545_v0 = vld [vmem:[%s4728_s25 + $0x688] sm:$0xff]  ;;  %v3566_v5 = vcombine.high %v417_v62, %v421_v63  ;;  %v3565_v12 = vcombine.low %v417_v62, %v421_v63  ;;  %v494_v62 = vld [vmem:[%s4728_s25 + $0x4f0] sm:$0xff] }
  0xdf   : > { %2035 = vmatpush1.bf16.msra.mxu1 %v3629_v7  ;;  %v549_v1 = vld [vmem:[%s4728_s25 + $0x6a8] sm:$0xff] }
  0xe0   : > { %2036 = vmatprep.subr.bf16.mxu1 %v3622_v9  ;;  %v3694_v6 = vcombine.high %v545_v0, %v549_v1  ;;  %v409_v7 = vld [vmem:[%s4728_s25 + $0x248] sm:$0xff]  ;;  %v3693_v13 = vcombine.low %v545_v0, %v549_v1 }
  0xe1   : > { %1996 = vmatpush1.bf16.msra.mxu0 %v3493_v15  ;;  %v413_v8 = vld [vmem:[%s4728_s25 + $0x268] sm:$0xff] }
  0xe2   : > { %1997 = vmatprep.subr.bf16.mxu0 %v3486_v17  ;;  %v537_v9 = vld [vmem:[%s4728_s25 + $0x648] sm:$0xff]  ;;  %v3558_v14 = vcombine.high %v409_v7, %v413_v8  ;;  %v3557_v21 = vcombine.low %v409_v7, %v413_v8  ;;  %v486_v7 = vld [vmem:[%s4728_s25 + $0x4b0] sm:$0xff] }
  0xe3   : > { %2037 = vmatpush1.bf16.msra.mxu1 %v3621_v16  ;;  %v541_v11 = vld [vmem:[%s4728_s25 + $0x668] sm:$0xff] }
  0xe4   : > { %2038 = vmatprep.subr.bf16.mxu1 %v3614_v18  ;;  %v3686_v15 = vcombine.high %v537_v9, %v541_v11  ;;  %v401_v16 = vld [vmem:[%s4728_s25 + $0x208] sm:$0xff]  ;;  %v3685_v22 = vcombine.low %v537_v9, %v541_v11 }
  0xe5   : > { %1998 = vmatpush1.bf16.msra.mxu0 %v3485_v24  ;;  %v405_v17 = vld [vmem:[%s4728_s25 + $0x228] sm:$0xff] }
  0xe6   : > { %1999 = vmatprep.subr.bf16.mxu0 %v3606_v26  ;;  %v529_v18 = vld [vmem:[%s4728_s25 + $0x608] sm:$0xff]  ;;  %v3550_v23 = vcombine.high %v401_v16, %v405_v17  ;;  %v398_v26 = vld [vmem:[%s4728_s25 + $0x1f0] sm:$0xff]  ;;  %v3549_v28 = vcombine.low %v401_v16, %v405_v17 }
  0xe7   : > { %2039 = vmatpush1.bf16.msra.mxu1 %v3613_v25  ;;  %v533_v20 = vld [vmem:[%s4728_s25 + $0x628] sm:$0xff]  ;;  %v394_v25 = vld [vmem:[%s4728_s25 + $0x1d0] sm:$0xff] }
  0xe8   : > { %2040 = vmatprep.subr.bf16.mxu1 %v3734_v57  ;;  %v3678_v24 = vcombine.high %v529_v18, %v533_v20  ;;  %v522_v57 = vld [vmem:[%s4728_s25 + $0x5d0] sm:$0xff]  ;;  %v3677_v29 = vcombine.low %v529_v18, %v533_v20  ;;  %v3544_v30 = vcombine.high %v394_v25, %v398_v26  ;;  %v3543_v36 = vcombine.low %v394_v25, %v398_v26 }
  0xe9   : > { %2000 = vmatpush2.bf16.msra.mxu0 %v3605_v31  ;;  %v3672_v31 = vcombine.high %v522_v57, %v526_v60  ;;  %v3671_v37 = vcombine.low %v522_v57, %v526_v60  ;;  %v478_v16 = vld [vmem:[%s4728_s25 + $0x470] sm:$0xff] }
  0xea   : > { %2001 = vmatprep.subr.bf16.mxu0 %v3598_v33  ;;  %v390_v33 = vld [vmem:[%s4728_s25 + $0x1b0] sm:$0xff] }
  0xeb   : > { %2041 = vmatpush2.bf16.msra.mxu1 %v3733_v32  ;;  %v386_v32 = vld [vmem:[%s4728_s25 + $0x190] sm:$0xff] }
  0xec   : > { %2042 = vmatprep.subr.bf16.mxu1 %v3726_v34  ;;  %v514_v34 = vld [vmem:[%s4728_s25 + $0x590] sm:$0xff]  ;;  %v3536_v38 = vcombine.high %v386_v32, %v390_v33  ;;  %v3535_v44 = vcombine.low %v386_v32, %v390_v33 }
  0xed   : > { %2002 = vmatpush2.bf16.msra.mxu0 %v3597_v39  ;;  %v3664_v39 = vcombine.high %v514_v34, %v518_v35  ;;  %v3663_v45 = vcombine.low %v514_v34, %v518_v35  ;;  %v470_v25 = vld [vmem:[%s4728_s25 + $0x430] sm:$0xff] }
  0xee   : > { %2003 = vmatprep.subr.bf16.mxu0 %v3590_v41  ;;  %v382_v41 = vld [vmem:[%s4728_s25 + $0x170] sm:$0xff] }
  0xef   : > { %2043 = vmatpush2.bf16.msra.mxu1 %v3725_v40  ;;  %v378_v40 = vld [vmem:[%s4728_s25 + $0x150] sm:$0xff] }
  0xf0   : > { %2044 = vmatprep.subr.bf16.mxu1 %v3718_v42  ;;  %v506_v42 = vld [vmem:[%s4728_s25 + $0x550] sm:$0xff]  ;;  %v3528_v46 = vcombine.high %v378_v40, %v382_v41  ;;  %v3527_v53 = vcombine.low %v378_v40, %v382_v41 }
  0xf1   : > { %2004 = vmatpush2.bf16.msra.mxu0 %v3589_v47  ;;  %v3656_v47 = vcombine.high %v506_v42, %v510_v43  ;;  %v3655_v54 = vcombine.low %v506_v42, %v510_v43  ;;  %v590_v32 = vld [vmem:[%s4728_s25 + $0x7f0] sm:$0xff] }
  0xf2   : > { %2005 = vmatprep.subr.bf16.mxu0 %v3582_v50  ;;  %v374_v50 = vld [vmem:[%s4728_s25 + $0x130] sm:$0xff] }
  0xf3   : > { %2045 = vmatpush2.bf16.msra.mxu1 %v3717_v49  ;;  %v370_v49 = vld [vmem:[%s4728_s25 + $0x110] sm:$0xff] }
  0xf4   : > { %2046 = vmatprep.subr.bf16.mxu1 %v3710_v51  ;;  %v498_v51 = vld [vmem:[%s4728_s25 + $0x510] sm:$0xff]  ;;  %v3520_v55 = vcombine.high %v370_v49, %v374_v50  ;;  %v3519_v63 = vcombine.low %v370_v49, %v374_v50 }
  0xf5   : > { %2006 = vmatpush2.bf16.msra.mxu0 %v3581_v56  ;;  %v3648_v56 = vcombine.high %v498_v51, %v502_v52  ;;  %v3647_v0 = vcombine.low %v498_v51, %v502_v52  ;;  %v582_v40 = vld [vmem:[%s4728_s25 + $0x7b0] sm:$0xff] }
  0xf6   : > { %2007 = vmatprep.subr.bf16.mxu0 %v3574_v59  ;;  %v366_v59 = vld [vmem:[%s4728_s25 + $0xf0] sm:$0xff] }
  0xf7   : > { %2047 = vmatpush2.bf16.msra.mxu1 %v3709_v58  ;;  %v362_v58 = vld [vmem:[%s4728_s25 + $0xd0] sm:$0xff] }
  0xf8   : > { %2048 = vmatprep.subr.bf16.mxu1 %v3702_v61  ;;  %v490_v61 = vld [vmem:[%s4728_s25 + $0x4d0] sm:$0xff]  ;;  %v3512_v1 = vcombine.high %v362_v58, %v366_v59  ;;  %v3511_v8 = vcombine.low %v362_v58, %v366_v59 }
  0xf9   : > { %2008 = vmatpush2.bf16.msra.mxu0 %v3573_v2  ;;  %v3640_v2 = vcombine.high %v490_v61, %v494_v62  ;;  %v3639_v9 = vcombine.low %v490_v61, %v494_v62  ;;  %v574_v49 = vld [vmem:[%s4728_s25 + $0x770] sm:$0xff] }
  0xfa   : > { %2009 = vmatprep.subr.bf16.mxu0 %v3566_v5  ;;  %v358_v5 = vld [vmem:[%s4728_s25 + $0xb0] sm:$0xff] }
  0xfb   : > { %2049 = vmatpush2.bf16.msra.mxu1 %v3701_v3  ;;  %v354_v3 = vld [vmem:[%s4728_s25 + $0x90] sm:$0xff] }
  0xfc   : > { %2050 = vmatprep.subr.bf16.mxu1 %v3694_v6  ;;  %v482_v6 = vld [vmem:[%s4728_s25 + $0x490] sm:$0xff]  ;;  %v3504_v11 = vcombine.high %v354_v3, %v358_v5  ;;  %v3503_v17 = vcombine.low %v354_v3, %v358_v5 }
  0xfd   : > { %2010 = vmatpush2.bf16.msra.mxu0 %v3565_v12  ;;  %v3632_v12 = vcombine.high %v482_v6, %v486_v7  ;;  %v3631_v18 = vcombine.low %v482_v6, %v486_v7  ;;  %v566_v58 = vld [vmem:[%s4728_s25 + $0x730] sm:$0xff] }
  0xfe   : > { %2011 = vmatprep.subr.bf16.mxu0 %v3558_v14  ;;  %v350_v14 = vld [vmem:[%s4728_s25 + $0x70] sm:$0xff] }
  0xff   : > { %2051 = vmatpush2.bf16.msra.mxu1 %v3693_v13  ;;  %v346_v13 = vld [vmem:[%s4728_s25 + $0x50] sm:$0xff] }
 0x100   : > { %2052 = vmatprep.subr.bf16.mxu1 %v3686_v15  ;;  %v474_v15 = vld [vmem:[%s4728_s25 + $0x450] sm:$0xff]  ;;  %v3496_v20 = vcombine.high %v346_v13, %v350_v14  ;;  %v3495_v26 = vcombine.low %v346_v13, %v350_v14 }
 0x101   : > { %2012 = vmatpush2.bf16.msra.mxu0 %v3557_v21  ;;  %v3624_v21 = vcombine.high %v474_v15, %v478_v16  ;;  %v3623_v57 = vcombine.low %v474_v15, %v478_v16  ;;  %v558_v3 = vld [vmem:[%s4728_s25 + $0x6f0] sm:$0xff] }
 0x102   : > { %2013 = vmatprep.subr.bf16.mxu0 %v3550_v23  ;;  %v342_v23 = vld [vmem:[%s4728_s25 + $0x30] sm:$0xff] }
 0x103   : > { %2053 = vmatpush2.bf16.msra.mxu1 %v3685_v22  ;;  %v338_v22 = vld [vmem:[%s4728_s25 + $0x10] sm:$0xff] }
 0x104   : > { %2054 = vmatprep.subr.bf16.mxu1 %v3678_v24  ;;  %v466_v24 = vld [vmem:[%s4728_s25 + $0x410] sm:$0xff]  ;;  %v3488_v60 = vcombine.high %v338_v22, %v342_v23  ;;  %v3487_v33 = vcombine.low %v338_v22, %v342_v23 }
 0x105   : > { %2014 = vmatpush2.bf16.msra.mxu0 %v3549_v28  ;;  %v3616_v28 = vcombine.high %v466_v24, %v470_v25  ;;  %v3615_v34 = vcombine.low %v466_v24, %v470_v25  ;;  %v550_v13 = vld [vmem:[%s4728_s25 + $0x6b0] sm:$0xff] }
 0x106   : > { %2065 = vmatprep.subr.bf16.mxu0 %v3544_v30  ;;  %v462_v30 = vld [vmem:[%s4728_s25 + $0x3f0] sm:$0xff] }
 0x107   : > { %2055 = vmatpush2.bf16.msra.mxu1 %v3677_v29  ;;  %v458_v29 = vld [vmem:[%s4728_s25 + $0x3d0] sm:$0xff] }
 0x108   : > { %2106 = vmatprep.subr.bf16.mxu1 %v3672_v31  ;;  %2016 = vmatmul.mubr.bf16.vlgmr.msra.gmra.mxu0 %v4845_v19  ;;  %v586_v31 = vld [vmem:[%s4728_s25 + $0x7d0] sm:$0xff]  ;;  %v3608_v35 = vcombine.high %v458_v29, %v462_v30  ;;  %v3607_v41 = vcombine.low %v458_v29, %v462_v30 }
 0x109   : > { %2066 = vmatpush1.bf16.msra.mxu0 %v3543_v36  ;;  %2097 = vmatprep.mubr.bf16.mxu0 %v4799_v4  ;;  %v3736_v36 = vcombine.high %v586_v31, %v590_v32  ;;  %v3735_v42 = vcombine.low %v586_v31, %v590_v32  ;;  %v542_v22 = vld [vmem:[%s4728_s25 + $0x670] sm:$0xff] }
 0x10a   : > { %2057 = vmatmul.mubr.bf16.vlgmr.msra.gmra.mxu1 %v4853_v27  ;;  %2067 = vmatprep.subr.bf16.mxu0 %v3536_v38  ;;  %v454_v38 = vld [vmem:[%s4728_s25 + $0x3b0] sm:$0xff] }
 0x10b   : > { %2107 = vmatpush1.bf16.msra.mxu1 %v3671_v37  ;;  %2138 = vmatprep.mubr.bf16.mxu1 %v4806_v10  ;;  %v450_v37 = vld [vmem:[%s4728_s25 + $0x390] sm:$0xff] }
 0x10c   : > { %2108 = vmatprep.subr.bf16.mxu1 %v3664_v39  ;;  %v578_v39 = vld [vmem:[%s4728_s25 + $0x790] sm:$0xff]  ;;  %v3600_v43 = vcombine.high %v450_v37, %v454_v38  ;;  %v3599_v50 = vcombine.low %v450_v37, %v454_v38  ;;  %v527_v37 = vld [vmem:[%s4728_s25 + $0x5f8] sm:$0xff] }
 0x10d   : > { %2068 = vmatpush1.bf16.msra.mxu0 %v3535_v44  ;;  %v3728_v44 = vcombine.high %v578_v39, %v582_v40  ;;  %v3727_v51 = vcombine.low %v578_v39, %v582_v40  ;;  %v534_v29 = vld [vmem:[%s4728_s25 + $0x630] sm:$0xff] }
 0x10e   : > { %2069 = vmatprep.subr.bf16.mxu0 %v3528_v46  ;;  %v446_v46 = vld [vmem:[%s4728_s25 + $0x370] sm:$0xff] }
 0x10f   : > { %2109 = vmatpush1.bf16.msra.mxu1 %v3663_v45  ;;  %v442_v45 = vld [vmem:[%s4728_s25 + $0x350] sm:$0xff] }
 0x110   : > { %2110 = vmatprep.subr.bf16.mxu1 %v3656_v47  ;;  %v570_v47 = vld [vmem:[%s4728_s25 + $0x750] sm:$0xff]  ;;  %v3592_v52 = vcombine.high %v442_v45, %v446_v46  ;;  %v3591_v59 = vcombine.low %v442_v45, %v446_v46  ;;  %v519_v45 = vld [vmem:[%s4728_s25 + $0x5b8] sm:$0xff] }
 0x111   : > { %2070 = vmatpush1.bf16.msra.mxu0 %v3527_v53  ;;  %v3720_v53 = vcombine.high %v570_v47, %v574_v49  ;;  %v3719_v61 = vcombine.low %v570_v47, %v574_v49 }
 0x112   : > { %2071 = vmatprep.subr.bf16.mxu0 %v3520_v55  ;;  %v438_v55 = vld [vmem:[%s4728_s25 + $0x330] sm:$0xff] }
 0x113   : > { %2111 = vmatpush1.bf16.msra.mxu1 %v3655_v54  ;;  %v434_v54 = vld [vmem:[%s4728_s25 + $0x310] sm:$0xff] }
 0x114   : > { %2112 = vmatprep.subr.bf16.mxu1 %v3648_v56  ;;  %v562_v56 = vld [vmem:[%s4728_s25 + $0x710] sm:$0xff]  ;;  %v3584_v62 = vcombine.high %v434_v54, %v438_v55  ;;  %v3583_v5 = vcombine.low %v434_v54, %v438_v55  ;;  %v511_v54 = vld [vmem:[%s4728_s25 + $0x578] sm:$0xff] }
 0x115   : > { %2072 = vmatpush1.bf16.msra.mxu0 %v3519_v63  ;;  %v3712_v63 = vcombine.high %v562_v56, %v566_v58  ;;  %v3711_v6 = vcombine.low %v562_v56, %v566_v58 }
 0x116   : > { %2073 = vmatprep.subr.bf16.mxu0 %v3512_v1  ;;  %v430_v1 = vld [vmem:[%s4728_s25 + $0x2f0] sm:$0xff] }
 0x117   : > { %2113 = vmatpush1.bf16.msra.mxu1 %v3647_v0  ;;  %v426_v0 = vld [vmem:[%s4728_s25 + $0x2d0] sm:$0xff] }
 0x118   : > { %2114 = vmatprep.subr.bf16.mxu1 %v3640_v2  ;;  %v554_v2 = vld [vmem:[%s4728_s25 + $0x6d0] sm:$0xff]  ;;  %v3576_v7 = vcombine.high %v426_v0, %v430_v1  ;;  %v3575_v14 = vcombine.low %v426_v0, %v430_v1  ;;  %v503_v0 = vld [vmem:[%s4728_s25 + $0x538] sm:$0xff] }
 0x119   : > { %2074 = vmatpush1.bf16.msra.mxu0 %v3511_v8  ;;  %v3704_v8 = vcombine.high %v554_v2, %v558_v3  ;;  %v3703_v15 = vcombine.low %v554_v2, %v558_v3 }
 0x11a   : > { %2075 = vmatprep.subr.bf16.mxu0 %v3504_v11  ;;  %v422_v11 = vld [vmem:[%s4728_s25 + $0x2b0] sm:$0xff] }
 0x11b   : > { %2115 = vmatpush1.bf16.msra.mxu1 %v3639_v9  ;;  %v418_v9 = vld [vmem:[%s4728_s25 + $0x290] sm:$0xff] }
 0x11c   : > { %2116 = vmatprep.subr.bf16.mxu1 %v3632_v12  ;;  %v546_v12 = vld [vmem:[%s4728_s25 + $0x690] sm:$0xff]  ;;  %v3568_v16 = vcombine.high %v418_v9, %v422_v11  ;;  %v3567_v23 = vcombine.low %v418_v9, %v422_v11 }
 0x11d   : > { %2076 = vmatpush1.bf16.msra.mxu0 %v3503_v17  ;;  %v3696_v17 = vcombine.high %v546_v12, %v550_v13  ;;  %v3695_v24 = vcombine.low %v546_v12, %v550_v13  ;;  %v355_v13 = vld [vmem:[%s4728_s25 + $0x98] sm:$0xff] }
 0x11e   : > { %2077 = vmatprep.subr.bf16.mxu0 %v3496_v20  ;;  %v414_v20 = vld [vmem:[%s4728_s25 + $0x270] sm:$0xff] }
 0x11f   : > { %2117 = vmatpush1.bf16.msra.mxu1 %v3631_v18  ;;  %v410_v18 = vld [vmem:[%s4728_s25 + $0x250] sm:$0xff] }
 0x120   : > { %2118 = vmatprep.subr.bf16.mxu1 %v3624_v21  ;;  %v538_v21 = vld [vmem:[%s4728_s25 + $0x650] sm:$0xff]  ;;  %v3560_v25 = vcombine.high %v410_v18, %v414_v20  ;;  %v3559_v30 = vcombine.low %v410_v18, %v414_v20 }
 0x121   : > { %2078 = vmatpush1.bf16.msra.mxu0 %v3495_v26  ;;  %v3688_v26 = vcombine.high %v538_v21, %v542_v22  ;;  %v3687_v31 = vcombine.low %v538_v21, %v542_v22  ;;  %v347_v22 = vld [vmem:[%s4728_s25 + $0x58] sm:$0xff] }
 0x122   : > { %2079 = vmatprep.subr.bf16.mxu0 %v3488_v60  ;;  %v406_v60 = vld [vmem:[%s4728_s25 + $0x230] sm:$0xff] }
 0x123   : > { %2119 = vmatpush1.bf16.msra.mxu1 %v3623_v57  ;;  %v402_v57 = vld [vmem:[%s4728_s25 + $0x210] sm:$0xff] }
 0x124   : > { %2120 = vmatprep.subr.bf16.mxu1 %v3616_v28  ;;  %v530_v28 = vld [vmem:[%s4728_s25 + $0x610] sm:$0xff]  ;;  %v3552_v32 = vcombine.high %v402_v57, %v406_v60  ;;  %v3551_v38 = vcombine.low %v402_v57, %v406_v60 }
 0x125   : > { %2080 = vmatpush1.bf16.msra.mxu0 %v3487_v33  ;;  %v3680_v33 = vcombine.high %v530_v28, %v534_v29  ;;  %v3679_v39 = vcombine.low %v530_v28, %v534_v29  ;;  %v339_v29 = vld [vmem:[%s4728_s25 + $0x18] sm:$0xff] }
 0x126   : > { %2081 = vmatprep.subr.bf16.mxu0 %v3608_v35  ;;  %v399_v35 = vld [vmem:[%s4728_s25 + $0x1f8] sm:$0xff] }
 0x127   : > { %2121 = vmatpush1.bf16.msra.mxu1 %v3615_v34  ;;  %v395_v34 = vld [vmem:[%s4728_s25 + $0x1d8] sm:$0xff] }
 0x128   : > { %2122 = vmatprep.subr.bf16.mxu1 %v3736_v36  ;;  %v523_v36 = vld [vmem:[%s4728_s25 + $0x5d8] sm:$0xff]  ;;  %v3546_v40 = vcombine.high %v395_v34, %v399_v35  ;;  %v3545_v46 = vcombine.low %v395_v34, %v399_v35 }
 0x129   : > { %2082 = vmatpush2.bf16.msra.mxu0 %v3607_v41  ;;  %v3674_v41 = vcombine.high %v523_v36, %v527_v37  ;;  %v3673_v47 = vcombine.low %v523_v36, %v527_v37  ;;  %v459_v37 = vld [vmem:[%s4728_s25 + $0x3d8] sm:$0xff] }
 0x12a   : > { %2083 = vmatprep.subr.bf16.mxu0 %v3600_v43  ;;  %v391_v43 = vld [vmem:[%s4728_s25 + $0x1b8] sm:$0xff] }
 0x12b   : > { %2123 = vmatpush2.bf16.msra.mxu1 %v3735_v42  ;;  %v387_v42 = vld [vmem:[%s4728_s25 + $0x198] sm:$0xff] }
 0x12c   : > { %2124 = vmatprep.subr.bf16.mxu1 %v3728_v44  ;;  %v515_v44 = vld [vmem:[%s4728_s25 + $0x598] sm:$0xff]  ;;  %v3538_v49 = vcombine.high %v387_v42, %v391_v43  ;;  %v3537_v55 = vcombine.low %v387_v42, %v391_v43 }
 0x12d   : > { %2084 = vmatpush2.bf16.msra.mxu0 %v3599_v50  ;;  %v3666_v50 = vcombine.high %v515_v44, %v519_v45  ;;  %v3665_v56 = vcombine.low %v515_v44, %v519_v45  ;;  %v451_v45 = vld [vmem:[%s4728_s25 + $0x398] sm:$0xff] }
 0x12e   : > { %2085 = vmatprep.subr.bf16.mxu0 %v3592_v52  ;;  %v383_v52 = vld [vmem:[%s4728_s25 + $0x178] sm:$0xff] }
 0x12f   : > { %2125 = vmatpush2.bf16.msra.mxu1 %v3727_v51  ;;  %v379_v51 = vld [vmem:[%s4728_s25 + $0x158] sm:$0xff] }
 0x130   : > { %2126 = vmatprep.subr.bf16.mxu1 %v3720_v53  ;;  %v507_v53 = vld [vmem:[%s4728_s25 + $0x558] sm:$0xff]  ;;  %v3530_v58 = vcombine.high %v379_v51, %v383_v52  ;;  %v3529_v1 = vcombine.low %v379_v51, %v383_v52 }
 0x131   : > { %2086 = vmatpush2.bf16.msra.mxu0 %v3591_v59  ;;  %v3658_v59 = vcombine.high %v507_v53, %v511_v54  ;;  %v3657_v2 = vcombine.low %v507_v53, %v511_v54  ;;  %v443_v54 = vld [vmem:[%s4728_s25 + $0x358] sm:$0xff] }
 0x132   : > { %2087 = vmatprep.subr.bf16.mxu0 %v3584_v62  ;;  %v375_v62 = vld [vmem:[%s4728_s25 + $0x138] sm:$0xff] }
 0x133   : > { %2127 = vmatpush2.bf16.msra.mxu1 %v3719_v61  ;;  %v371_v61 = vld [vmem:[%s4728_s25 + $0x118] sm:$0xff] }
 0x134   : > { %2128 = vmatprep.subr.bf16.mxu1 %v3712_v63  ;;  %v499_v63 = vld [vmem:[%s4728_s25 + $0x518] sm:$0xff]  ;;  %v3522_v3 = vcombine.high %v371_v61, %v375_v62  ;;  %v3521_v9 = vcombine.low %v371_v61, %v375_v62 }
 0x135   : > { %2088 = vmatpush2.bf16.msra.mxu0 %v3583_v5  ;;  %v3650_v5 = vcombine.high %v499_v63, %v503_v0 }
 0x136   : > { %2089 = vmatprep.subr.bf16.mxu0 %v3576_v7  ;;  %v367_v7 = vld [vmem:[%s4728_s25 + $0xf8] sm:$0xff] }
 0x137   : > { %2129 = vmatpush2.bf16.msra.mxu1 %v3711_v6  ;;  %v363_v6 = vld [vmem:[%s4728_s25 + $0xd8] sm:$0xff] }
 0x138   : > { %2130 = vmatprep.subr.bf16.mxu1 %v3704_v8  ;;  %v491_v8 = vld [vmem:[%s4728_s25 + $0x4d8] sm:$0xff]  ;;  %v3514_v11 = vcombine.high %v363_v6, %v367_v7 }
 0x139   : > { %2090 = vmatpush2.bf16.msra.mxu0 %v3575_v14  ;;  %v359_v14 = vld [vmem:[%s4728_s25 + $0xb8] sm:$0xff] }
 0x13a   : > { %2091 = vmatprep.subr.bf16.mxu0 %v3568_v16  ;;  %v487_v16 = vld [vmem:[%s4728_s25 + $0x4b8] sm:$0xff]  ;;  %v3506_v20 = vcombine.high %v355_v13, %v359_v14 }
 0x13b   : > { %2131 = vmatpush2.bf16.msra.mxu1 %v3703_v15  ;;  %v483_v15 = vld [vmem:[%s4728_s25 + $0x498] sm:$0xff] }
 0x13c   : > { %2132 = vmatprep.subr.bf16.mxu1 %v3696_v17  ;;  %v3513_v17 = vcombine.low %v363_v6, %v367_v7  ;;  %v3634_v21 = vcombine.high %v483_v15, %v487_v16  ;;  %v3633_v57 = vcombine.low %v483_v15, %v487_v16  ;;  %v419_v16 = vld [vmem:[%s4728_s25 + $0x298] sm:$0xff] }
 0x13d   : > { %2092 = vmatpush2.bf16.msra.mxu0 %v3567_v23  ;;  %v351_v23 = vld [vmem:[%s4728_s25 + $0x78] sm:$0xff] }
 0x13e   : > { %2093 = vmatprep.subr.bf16.mxu0 %v3560_v25  ;;  %v479_v25 = vld [vmem:[%s4728_s25 + $0x478] sm:$0xff]  ;;  %v3498_v60 = vcombine.high %v347_v22, %v351_v23 }
 0x13f   : > { %2133 = vmatpush2.bf16.msra.mxu1 %v3695_v24  ;;  %v475_v24 = vld [vmem:[%s4728_s25 + $0x458] sm:$0xff] }
 0x140   : > { %2134 = vmatprep.subr.bf16.mxu1 %v3688_v26  ;;  %v3505_v26 = vcombine.low %v355_v13, %v359_v14  ;;  %v3626_v28 = vcombine.high %v475_v24, %v479_v25  ;;  %v3625_v34 = vcombine.low %v475_v24, %v479_v25  ;;  %v411_v25 = vld [vmem:[%s4728_s25 + $0x258] sm:$0xff] }
 0x141   : > { %2094 = vmatpush2.bf16.msra.mxu0 %v3559_v30  ;;  %v343_v30 = vld [vmem:[%s4728_s25 + $0x38] sm:$0xff] }
 0x142   : > { %2095 = vmatprep.subr.bf16.mxu0 %v3552_v32  ;;  %v471_v32 = vld [vmem:[%s4728_s25 + $0x438] sm:$0xff]  ;;  %v3490_v35 = vcombine.high %v339_v29, %v343_v30 }
 0x143   : > { %2135 = vmatpush2.bf16.msra.mxu1 %v3687_v31  ;;  %v467_v31 = vld [vmem:[%s4728_s25 + $0x418] sm:$0xff] }
 0x144   : > { %2136 = vmatprep.subr.bf16.mxu1 %v3680_v33  ;;  %v3497_v33 = vcombine.low %v347_v22, %v351_v23  ;;  %v3618_v36 = vcombine.high %v467_v31, %v471_v32  ;;  %v3617_v42 = vcombine.low %v467_v31, %v471_v32  ;;  %v403_v32 = vld [vmem:[%s4728_s25 + $0x218] sm:$0xff] }
 0x145   : > { %2096 = vmatpush2.bf16.msra.mxu0 %v3551_v38  ;;  %v463_v38 = vld [vmem:[%s4728_s25 + $0x3f8] sm:$0xff] }
 0x146   : > { %2147 = vmatprep.subr.bf16.mxu0 %v3546_v40  ;;  %v591_v40 = vld [vmem:[%s4728_s25 + $0x7f8] sm:$0xff]  ;;  %v3610_v43 = vcombine.high %v459_v37, %v463_v38 }
 0x147   : > { %2137 = vmatpush2.bf16.msra.mxu1 %v3679_v39  ;;  %v587_v39 = vld [vmem:[%s4728_s25 + $0x7d8] sm:$0xff] }
 0x148   : > { %2188 = vmatprep.subr.bf16.mxu1 %v3674_v41  ;;  %2098 = vmatmul.mubr.bf16.vlgmr.msra.gmra.mxu0 %v4845_v19  ;;  %v3489_v41 = vcombine.low %v339_v29, %v343_v30  ;;  %v3738_v44 = vcombine.high %v587_v39, %v591_v40  ;;  %v3737_v51 = vcombine.low %v587_v39, %v591_v40 }
 0x149   : > { %2148 = vmatpush1.bf16.msra.mxu0 %v3545_v46  ;;  %2179 = vmatprep.mubr.bf16.mxu0 %v4799_v4  ;;  %v495_v4 = vld [vmem:[%s4728_s25 + $0x4f8] sm:$0xff] }
 0x14a   : > { %2139 = vmatmul.mubr.bf16.vlgmr.msra.gmra.mxu1 %v4853_v27  ;;  %2149 = vmatprep.subr.bf16.mxu0 %v3538_v49  ;;  %v3642_v12 = vcombine.high %v491_v8, %v495_v4  ;;  %v3641_v18 = vcombine.low %v491_v8, %v495_v4  ;;  %v455_v46 = vld [vmem:[%s4728_s25 + $0x3b8] sm:$0xff] }
 0x14b   : > { %2189 = vmatpush1.bf16.msra.mxu1 %v3673_v47  ;;  %2220 = vmatprep.mubr.bf16.mxu1 %v4806_v10  ;;  %v3649_v10 = vcombine.low %v499_v63, %v503_v0  ;;  %v579_v47 = vld [vmem:[%s4728_s25 + $0x798] sm:$0xff]  ;;  %v3602_v52 = vcombine.high %v451_v45, %v455_v46 }
 0x14c   : > { %2190 = vmatprep.subr.bf16.mxu1 %v3666_v50  ;;  %v583_v49 = vld [vmem:[%s4728_s25 + $0x7b8] sm:$0xff]  ;;  %v3609_v50 = vcombine.low %v459_v37, %v463_v38 }
 0x14d   : > { %2150 = vmatpush1.bf16.msra.mxu0 %v3537_v55  ;;  %v3730_v53 = vcombine.high %v579_v47, %v583_v49  ;;  %v447_v55 = vld [vmem:[%s4728_s25 + $0x378] sm:$0xff]  ;;  %v3729_v61 = vcombine.low %v579_v47, %v583_v49 }
 0x14e   : > { %2151 = vmatprep.subr.bf16.mxu0 %v3530_v58  ;;  %v575_v58 = vld [vmem:[%s4728_s25 + $0x778] sm:$0xff]  ;;  %v3594_v62 = vcombine.high %v443_v54, %v447_v55 }
 0x14f   : > { %2191 = vmatpush1.bf16.msra.mxu1 %v3665_v56  ;;  %v571_v56 = vld [vmem:[%s4728_s25 + $0x758] sm:$0xff] }
 0x150   : > { %2192 = vmatprep.subr.bf16.mxu1 %v3658_v59  ;;  %v3601_v59 = vcombine.low %v451_v45, %v455_v46  ;;  %v3722_v63 = vcombine.high %v571_v56, %v575_v58  ;;  %v435_v0 = vld [vmem:[%s4728_s25 + $0x318] sm:$0xff]  ;;  %v3721_v6 = vcombine.low %v571_v56, %v575_v58 }
 0x151   : > { %2152 = vmatpush1.bf16.msra.mxu0 %v3529_v1  ;;  %v439_v1 = vld [vmem:[%s4728_s25 + $0x338] sm:$0xff] }
 0x152   : > { %2153 = vmatprep.subr.bf16.mxu0 %v3522_v3  ;;  %v567_v3 = vld [vmem:[%s4728_s25 + $0x738] sm:$0xff]  ;;  %v3586_v7 = vcombine.high %v435_v0, %v439_v1 }
 0x153   : > { %2193 = vmatpush1.bf16.msra.mxu1 %v3657_v2  ;;  %v563_v2 = vld [vmem:[%s4728_s25 + $0x718] sm:$0xff] }
 0x154   : > { %2194 = vmatprep.subr.bf16.mxu1 %v3650_v5  ;;  %v3593_v5 = vcombine.low %v443_v54, %v447_v55  ;;  %v3714_v8 = vcombine.high %v563_v2, %v567_v3  ;;  %v427_v4 = vld [vmem:[%s4728_s25 + $0x2d8] sm:$0xff]  ;;  %v3713_v13 = vcombine.low %v563_v2, %v567_v3  ;;  %v4464_v54 = vmov 1983009808  }
 0x155   : > { %2154 = vmatpush1.bf16.msra.mxu0 %v3521_v9  ;;  %v431_v9 = vld [vmem:[%s4728_s25 + $0x2f8] sm:$0xff]  ;;  %v2240_v55 = vunpack.c.l.s4 %v4464_v54 }
 0x156   : > { %2155 = vmatprep.subr.bf16.mxu0 %v3514_v11  ;;  %v559_v11 = vld [vmem:[%s4728_s25 + $0x6f8] sm:$0xff]  ;;  %v3578_v14 = vcombine.high %v427_v4, %v431_v9 }
 0x157   : > { %2195 = vmatpush1.bf16.msra.mxu1 %v3649_v10  ;;  %v555_v10 = vld [vmem:[%s4728_s25 + $0x6d8] sm:$0xff]  ;;  %v2241_v56 = vunpack.c.0.s8 %v2240_v55 }
 0x158   : > { %2196 = vmatprep.subr.bf16.mxu1 %v3642_v12  ;;  %v3585_v12 = vcombine.low %v435_v0, %v439_v1  ;;  %v3706_v15 = vcombine.high %v555_v10, %v559_v11  ;;  %v3705_v22 = vcombine.low %v555_v10, %v559_v11 }
 0x159   : > { %2156 = vmatpush1.bf16.msra.mxu0 %v3513_v17  ;;  %v423_v17 = vld [vmem:[%s4728_s25 + $0x2b8] sm:$0xff] }
 0x15a   : > { %2157 = vmatprep.subr.bf16.mxu0 %v3506_v20  ;;  %v551_v20 = vld [vmem:[%s4728_s25 + $0x6b8] sm:$0xff]  ;;  %v3570_v23 = vcombine.high %v419_v16, %v423_v17 }
 0x15b   : > { %2197 = vmatpush1.bf16.msra.mxu1 %v3641_v18  ;;  %v547_v18 = vld [vmem:[%s4728_s25 + $0x698] sm:$0xff] }
 0x15c   : > { %2198 = vmatprep.subr.bf16.mxu1 %v3634_v21  ;;  %v3577_v21 = vcombine.low %v427_v4, %v431_v9  ;;  %v3698_v24 = vcombine.high %v547_v18, %v551_v20  ;;  %v3697_v29 = vcombine.low %v547_v18, %v551_v20 }
 0x15d   : > { %2158 = vmatpush1.bf16.msra.mxu0 %v3505_v26  ;;  %v415_v26 = vld [vmem:[%s4728_s25 + $0x278] sm:$0xff] }
 0x15e   : > { %2159 = vmatprep.subr.bf16.mxu0 %v3498_v60  ;;  %v543_v60 = vld [vmem:[%s4728_s25 + $0x678] sm:$0xff]  ;;  %v3562_v30 = vcombine.high %v411_v25, %v415_v26 }
 0x15f   : > { %2199 = vmatpush1.bf16.msra.mxu1 %v3633_v57  ;;  %v539_v57 = vld [vmem:[%s4728_s25 + $0x658] sm:$0xff] }
 0x160   : > { %2200 = vmatprep.subr.bf16.mxu1 %v3626_v28  ;;  %v3569_v28 = vcombine.low %v419_v16, %v423_v17  ;;  %v3690_v31 = vcombine.high %v539_v57, %v543_v60  ;;  %v3689_v37 = vcombine.low %v539_v57, %v543_v60 }
 0x161   : > { %2160 = vmatpush1.bf16.msra.mxu0 %v3497_v33  ;;  %v407_v33 = vld [vmem:[%s4728_s25 + $0x238] sm:$0xff] }
 0x162   : > { %2161 = vmatprep.subr.bf16.mxu0 %v3490_v35  ;;  %v535_v35 = vld [vmem:[%s4728_s25 + $0x638] sm:$0xff]  ;;  %v3554_v38 = vcombine.high %v403_v32, %v407_v33  ;;  %v3553_v40 = vcombine.low %v403_v32, %v407_v33  ;;  %v334_v33 = vld [vmem:[#allocation2 + $0x8] sm:$0xff] }
 0x163   : > { %2201 = vmatpush1.bf16.msra.mxu1 %v3625_v34  ;;  %v531_v34 = vld [vmem:[%s4728_s25 + $0x618] sm:$0xff] }
 0x164   : > { %2202 = vmatprep.subr.bf16.mxu1 %v3618_v36  ;;  %v3561_v36 = vcombine.low %v411_v25, %v415_v26  ;;  %v3682_v39 = vcombine.high %v531_v34, %v535_v35 }
 0x165   : > { %2162 = vmatpush1.bf16.msra.mxu0 %v3489_v41  ;;  %v3681_v41 = vcombine.low %v531_v34, %v535_v35 }
 0x166   : > { %2163 = vmatprep.subr.bf16.mxu0 %v3610_v43 }
 0x167   : > { %2203 = vmatpush1.bf16.msra.mxu1 %v3617_v42 }
 0x168   : > { %2204 = vmatprep.subr.bf16.mxu1 %v3738_v44 }
 0x169   : > { %2164 = vmatpush2.bf16.msra.mxu0 %v3609_v50 }
 0x16a   : > { %2165 = vmatprep.subr.bf16.mxu0 %v3602_v52 }
 0x16b   : > { %2205 = vmatpush2.bf16.msra.mxu1 %v3737_v51 }
 0x16c   : > { %2206 = vmatprep.subr.bf16.mxu1 %v3730_v53 }
 0x16d   : > { %2166 = vmatpush2.bf16.msra.mxu0 %v3601_v59 }
 0x16e   : > { %2167 = vmatprep.subr.bf16.mxu0 %v3594_v62 }
 0x16f   : > { %2207 = vmatpush2.bf16.msra.mxu1 %v3729_v61 }
 0x170   : > { %2208 = vmatprep.subr.bf16.mxu1 %v3722_v63  ;;  %v5054_v63 = vsub.s32 %v2241_v56, %v4779_v48 }
 0x171   : > { %2168 = vmatpush2.bf16.msra.mxu0 %v3593_v5 }
 0x172   : > { %2169 = vmatprep.subr.bf16.mxu0 %v3586_v7 }
 0x173   : > { %2209 = vmatpush2.bf16.msra.mxu1 %v3721_v6 }
 0x174   : > { %2210 = vmatprep.subr.bf16.mxu1 %v3714_v8  ;;  %v333_v8 = vld [vmem:[#allocation2] sm:$0xff] }
 0x175   : > { %2170 = vmatpush2.bf16.msra.mxu0 %v3585_v12 }
 0x176   : > { %2171 = vmatprep.subr.bf16.mxu0 %v3578_v14 }
 0x177   : > { %2211 = vmatpush2.bf16.msra.mxu1 %v3713_v13 }
 0x178   : > { %2212 = vmatprep.subr.bf16.mxu1 %v3706_v15 }
 0x179   : > { %2172 = vmatpush2.bf16.msra.mxu0 %v3577_v21 }
 0x17a   : > { %2173 = vmatprep.subr.bf16.mxu0 %v3570_v23 }
 0x17b   : > { %2213 = vmatpush2.bf16.msra.mxu1 %v3705_v22 }
 0x17c   : > { %2214 = vmatprep.subr.bf16.mxu1 %v3698_v24 }
 0x17d   : > { %2174 = vmatpush2.bf16.msra.mxu0 %v3569_v28 }
 0x17e   : > { %2175 = vmatprep.subr.bf16.mxu0 %v3562_v30 }
 0x17f   : > { %2215 = vmatpush2.bf16.msra.mxu1 %v3697_v29 }
 0x180   : > { %2216 = vmatprep.subr.bf16.mxu1 %v3690_v31 }
 0x181   : > { %2176 = vmatpush2.bf16.msra.mxu0 %v3561_v36 }
 0x182   : > { %2177 = vmatprep.subr.bf16.mxu0 %v3554_v38 }
 0x183   : > { %2217 = vmatpush2.bf16.msra.mxu1 %v3689_v37 }
 0x184   : > { %2218 = vmatprep.subr.bf16.mxu1 %v3682_v39 }
 0x185   : > { %2178 = vmatpush2.bf16.msra.mxu0 %v3553_v40 }
 0x187   : > { %2219 = vmatpush2.bf16.msra.mxu1 %v3681_v41 }
 0x188   : > { %v1935_v42 = vpop.f32.mrf.mxu0  ;;  %2180 = vmatmul.mubr.bf16.vlgmr.msra.gmra.mxu0 %v4845_v19 }
 0x18a   : > { %v1976_v43 = vpop.f32.mrf.mxu1  ;;  %2221 = vmatmul.mubr.bf16.vlgmr.msra.gmra.mxu1 %v4853_v27  ;;  %v1937_v45 = vpop.f32.mrf.mxu0 }
 0x18b   : > { %v1977_v44 = vadd.f32 %v1976_v43, %v1935_v42 }
 0x18c   : > { %v1978_v46 = vpop.f32.mrf.mxu1  ;;  %v1939_v49 = vpop.f32.mrf.mxu0 }
 0x18d   : > { %v1979_v47 = vadd.f32 %v1978_v46, %v1937_v45 }
 0x18e   : > { %v1980_v50 = vpop.f32.mrf.mxu1  ;;  %v1940_v52 = vpop.f32.mrf.mxu0 }
 0x18f   : > { %v2237_v51 = vcombine.low %v1977_v44, %v1979_v47 }
 0x190   : > { %v1981_v53 = vpop.f32.mrf.mxu1 }
 0x191   : > { %v2245_v6 = vrot.slane %v2237_v51, %v5054_v63 }
 0x1c8   : > { %v2017_v58 = vpop.f32.mrf.mxu0 }
 0x1ca   : > { %v2058_v59 = vpop.f32.mrf.mxu1  ;;  %v2019_v62 = vpop.f32.mrf.mxu0 }
 0x1cb   : > { %v2059_v61 = vadd.f32 %v2058_v59, %v2017_v58 }
 0x1cc   : > { %v2060_v19 = vpop.f32.mrf.mxu1  ;;  %v2021_v0 = vpop.f32.mrf.mxu0 }
 0x1cd   : > { %v2061_v27 = vadd.f32 %v2060_v19, %v2019_v62 }
 0x1ce   : > { %v2062_v1 = vpop.f32.mrf.mxu1  ;;  %v2022_v3 = vpop.f32.mrf.mxu0 }
 0x1cf   : > { %v2238_v2 = vcombine.low %v2059_v61, %v2061_v27 }
 0x1d0   : > { %v2063_v5 = vpop.f32.mrf.mxu1 }
 0x1d1   : > { %v2252_v7 = vrot.slane %v2238_v2, %v5054_v63 }
 0x1d3   : > { %v2253_v4 = vcombine.low %v2245_v6, %v2252_v7 }
 0x1d5   : > { %v2273_v9 = vadd.f32 %v2253_v4, %v333_v8 }
 0x1d7   : > { %2275 = vst [vmem:[#allocation2] sm:$0xff] %v2273_v9 }
 0x208   : > { %v2099_v10 = vpop.f32.mrf.mxu0 }
 0x20a   : > { %v2140_v11 = vpop.f32.mrf.mxu1  ;;  %v2101_v13 = vpop.f32.mrf.mxu0 }
 0x20b   : > { %v2141_v12 = vadd.f32 %v2140_v11, %v2099_v10 }
 0x20c   : > { %v2142_v48 = vpop.f32.mrf.mxu1  ;;  %v2103_v15 = vpop.f32.mrf.mxu0 }
 0x20d   : > { %v2143_v14 = vadd.f32 %v2142_v48, %v2101_v13 }
 0x20e   : > { %v2144_v16 = vpop.f32.mrf.mxu1  ;;  %v2104_v18 = vpop.f32.mrf.mxu0 }
 0x20f   : > { %v2254_v17 = vcombine.low %v2141_v12, %v2143_v14 }
 0x210   : > { %v2145_v20 = vpop.f32.mrf.mxu1 }
 0x211   : > { %v2262_v31 = vrot.slane %v2254_v17, %v5054_v63 }
 0x248   : > { %v2181_v21 = vpop.f32.mrf.mxu0 }
 0x24a   : > { %v2222_v22 = vpop.f32.mrf.mxu1  ;;  %v2183_v23 = vpop.f32.mrf.mxu0 }
 0x24b   : > { %v2223_v25 = vadd.f32 %v2222_v22, %v2181_v21 }
 0x24c   : > { %v2224_v24 = vpop.f32.mrf.mxu1  ;;  %v2185_v57 = vpop.f32.mrf.mxu0 }
 0x24d   : > { %v2225_v26 = vadd.f32 %v2224_v24, %v2183_v23 }
 0x24e   : > { %v2226_v60 = vpop.f32.mrf.mxu1  ;;  %v2186_v29 = vpop.f32.mrf.mxu0 }
 0x24f   : > { %v2255_v28 = vcombine.low %v2223_v25, %v2225_v26 }
 0x250   : > { %v2227_v30 = vpop.f32.mrf.mxu1 }
 0x251   : > { %v2269_v32 = vrot.slane %v2255_v28, %v5054_v63 }
 0x253   : > { %v2270_v34 = vcombine.low %v2262_v31, %v2269_v32  ;;  %2280 = sbr.rel (%p3739_p3) target bundleno = 931 (0x3a3), region = 52 }
 0x255   : > { %v2274_v35 = vadd.f32 %v2270_v34, %v334_v33 }
 0x257   : > { %2276 = vst [vmem:[#allocation2 + $0x8] sm:$0xff] %v2274_v35 }
 0x258   : > { %v4024_v36 = vld [vmem:[%s4738_s18 + $0x74] ss:$8 sps:$4 sm:$0xff]   ;;  %v4028_v38 = vld [vmem:[%s4738_s18 + $0x70] ss:$8 sps:$4 sm:$0xff]   ;;  %v4030_v40 = vld [vmem:[%s4738_s18 + $0x64] ss:$8 sps:$4 sm:$0xff]  }
 0x259   : > { %v4026_v37 = vld [vmem:[%s4738_s18 + $0x174] ss:$8 sps:$4 sm:$0xff]   ;;  %3107 = vmatprep.subr.bf16.mxu0 %v4024_v36  ;;  %v4029_v39 = vld [vmem:[%s4738_s18 + $0x170] ss:$8 sps:$4 sm:$0xff]   ;;  %v4032_v41 = vld [vmem:[%s4738_s18 + $0x164] ss:$8 sps:$4 sm:$0xff]  }
 0x25a   : > { %3148 = vmatprep.subr.bf16.mxu1 %v4026_v37  ;;  %3108 = vmatpush1.bf16.msra.mxu0 %v4028_v38  ;;  %v4034_v42 = vld [vmem:[%s4738_s18 + $0x60] ss:$8 sps:$4 sm:$0xff]   ;;  %v4036_v44 = vld [vmem:[%s4738_s18 + $0x54] ss:$8 sps:$4 sm:$0xff]   ;;  %v4040_v46 = vld [vmem:[%s4738_s18 + $0x50] ss:$8 sps:$4 sm:$0xff]  }
 0x25b   : > { %3149 = vmatpush1.bf16.msra.mxu1 %v4029_v39  ;;  %3109 = vmatprep.subr.bf16.mxu0 %v4030_v40  ;;  %v4035_v43 = vld [vmem:[%s4738_s18 + $0x160] ss:$8 sps:$4 sm:$0xff]   ;;  %v4038_v45 = vld [vmem:[%s4738_s18 + $0x154] ss:$8 sps:$4 sm:$0xff]   ;;  %v4041_v47 = vld [vmem:[%s4738_s18 + $0x150] ss:$8 sps:$4 sm:$0xff]  }
 0x25c   : > { %3150 = vmatprep.subr.bf16.mxu1 %v4032_v41  ;;  %v4042_v49 = vld [vmem:[%s4738_s18 + $0x44] ss:$8 sps:$4 sm:$0xff]   ;;  %v4046_v51 = vld [vmem:[%s4738_s18 + $0x40] ss:$8 sps:$4 sm:$0xff]   ;;  %v4048_v53 = vld [vmem:[%s4738_s18 + $0x34] ss:$8 sps:$4 sm:$0xff]  }
 0x25d   : > { %v4044_v50 = vld [vmem:[%s4738_s18 + $0x144] ss:$8 sps:$4 sm:$0xff]   ;;  %v4047_v52 = vld [vmem:[%s4738_s18 + $0x140] ss:$8 sps:$4 sm:$0xff]   ;;  %v4050_v54 = vld [vmem:[%s4738_s18 + $0x134] ss:$8 sps:$4 sm:$0xff]  }
 0x25e   : > { %3110 = vmatpush1.bf16.msra.mxu0 %v4034_v42  ;;  %v4052_v55 = vld [vmem:[%s4738_s18 + $0x30] ss:$8 sps:$4 sm:$0xff]   ;;  %v4054_v58 = vld [vmem:[%s4738_s18 + $0x24] ss:$8 sps:$4 sm:$0xff]   ;;  %v4058_v61 = vld [vmem:[%s4738_s18 + $0x20] ss:$8 sps:$4 sm:$0xff]  }
 0x25f   : > { %3151 = vmatpush1.bf16.msra.mxu1 %v4035_v43  ;;  %3111 = vmatprep.subr.bf16.mxu0 %v4036_v44  ;;  %v4053_v56 = vld [vmem:[%s4738_s18 + $0x130] ss:$8 sps:$4 sm:$0xff]   ;;  %v4056_v59 = vld [vmem:[%s4738_s18 + $0x124] ss:$8 sps:$4 sm:$0xff]   ;;  %v4059_v62 = vld [vmem:[%s4738_s18 + $0x120] ss:$8 sps:$4 sm:$0xff]  }
 0x260   : > { %3152 = vmatprep.subr.bf16.mxu1 %v4038_v45  ;;  %v4060_v19 = vld [vmem:[%s4738_s18 + $0x14] ss:$8 sps:$4 sm:$0xff]   ;;  %v4064_v0 = vld [vmem:[%s4738_s18 + $0x10] ss:$8 sps:$4 sm:$0xff]   ;;  %v4066_v2 = vld [vmem:[%s4738_s18 + $0x4] ss:$8 sps:$4 sm:$0xff]  }
 0x261   : > { %v4062_v27 = vld [vmem:[%s4738_s18 + $0x114] ss:$8 sps:$4 sm:$0xff]   ;;  %v4065_v1 = vld [vmem:[%s4738_s18 + $0x110] ss:$8 sps:$4 sm:$0xff]   ;;  %v4068_v3 = vld [vmem:[%s4738_s18 + $0x104] ss:$8 sps:$4 sm:$0xff]  }
 0x262   : > { %3112 = vmatpush1.bf16.msra.mxu0 %v4040_v46  ;;  %v4070_v5 = vld [vmem:[%s4738_s18] ss:$8 sps:$4 sm:$0xff]   ;;  %v4072_v7 = vld [vmem:[%s4738_s18 + $0xf4] ss:$8 sps:$4 sm:$0xff]   ;;  %v4076_v4 = vld [vmem:[%s4738_s18 + $0xf0] ss:$8 sps:$4 sm:$0xff]  }
 0x263   : > { %3153 = vmatpush1.bf16.msra.mxu1 %v4041_v47  ;;  %3113 = vmatprep.subr.bf16.mxu0 %v4042_v49  ;;  %v4071_v6 = vld [vmem:[%s4738_s18 + $0x100] ss:$8 sps:$4 sm:$0xff]   ;;  %v4074_v8 = vld [vmem:[%s4738_s18 + $0x1f4] ss:$8 sps:$4 sm:$0xff]   ;;  %v4077_v9 = vld [vmem:[%s4738_s18 + $0x1f0] ss:$8 sps:$4 sm:$0xff]  }
 0x264   : > { %3154 = vmatprep.subr.bf16.mxu1 %v4044_v50  ;;  %v4078_v10 = vld [vmem:[%s4738_s18 + $0xe4] ss:$8 sps:$4 sm:$0xff]   ;;  %v4082_v12 = vld [vmem:[%s4738_s18 + $0xe0] ss:$8 sps:$4 sm:$0xff]   ;;  %v4084_v48 = vld [vmem:[%s4738_s18 + $0xd4] ss:$8 sps:$4 sm:$0xff]  }
 0x265   : > { %v4080_v11 = vld [vmem:[%s4738_s18 + $0x1e4] ss:$8 sps:$4 sm:$0xff]   ;;  %v4083_v13 = vld [vmem:[%s4738_s18 + $0x1e0] ss:$8 sps:$4 sm:$0xff]   ;;  %v4086_v14 = vld [vmem:[%s4738_s18 + $0x1d4] ss:$8 sps:$4 sm:$0xff]  }
 0x266   : > { %3114 = vmatpush1.bf16.msra.mxu0 %v4046_v51  ;;  %v4088_v15 = vld [vmem:[%s4738_s18 + $0xd0] ss:$8 sps:$4 sm:$0xff]   ;;  %v4090_v17 = vld [vmem:[%s4738_s18 + $0xc4] ss:$8 sps:$4 sm:$0xff]   ;;  %v4094_v21 = vld [vmem:[%s4738_s18 + $0xc0] ss:$8 sps:$4 sm:$0xff]  }
 0x267   : > { %3155 = vmatpush1.bf16.msra.mxu1 %v4047_v52  ;;  %3115 = vmatprep.subr.bf16.mxu0 %v4048_v53  ;;  %v4089_v16 = vld [vmem:[%s4738_s18 + $0x1d0] ss:$8 sps:$4 sm:$0xff]   ;;  %v4092_v18 = vld [vmem:[%s4738_s18 + $0x1c4] ss:$8 sps:$4 sm:$0xff]   ;;  %v4095_v23 = vld [vmem:[%s4738_s18 + $0x1c0] ss:$8 sps:$4 sm:$0xff]  }
 0x268   : > { %3156 = vmatprep.subr.bf16.mxu1 %v4050_v54  ;;  %v2281_v20 = vld [vmem:[#allocation2] sm:$0xff]  ;;  %v4096_v24 = vld [vmem:[%s4738_s18 + $0xb4] ss:$8 sps:$4 sm:$0xff]   ;;  %v4100_v60 = vld [vmem:[%s4738_s18 + $0xb0] ss:$8 sps:$4 sm:$0xff]  }
 0x269   : > { %v2283_v22 = vmax.f32 %v2281_v20, 0.0  ;;  %v4098_v25 = vld [vmem:[%s4738_s18 + $0x1b4] ss:$8 sps:$4 sm:$0xff]   ;;  %v4101_v30 = vld [vmem:[%s4738_s18 + $0x1b0] ss:$8 sps:$4 sm:$0xff]  }
 0x26a   : > { %3116 = vmatpush1.bf16.msra.mxu0 %v4052_v55  ;;  %v4102_v31 = vld [vmem:[%s4738_s18 + $0xa4] ss:$8 sps:$4 sm:$0xff]   ;;  %v4106_v35 = vld [vmem:[%s4738_s18 + $0xa0] ss:$8 sps:$4 sm:$0xff]   ;;  %v4108_v38 = vld [vmem:[%s4738_s18 + $0x94] ss:$8 sps:$4 sm:$0xff]  }
 0x26b   : > { %3157 = vmatpush1.bf16.msra.mxu1 %v4053_v56  ;;  %3117 = vmatprep.subr.bf16.mxu0 %v4054_v58  ;;  %2285 = vst [vmem:[%s4752_s6] sm:$0xff] %v2283_v22  ;;  %v2296_v26 = vrot.slane %v2283_v22, %v5054_v63  ;;  %v2289_v57 = vcombine.high %v2283_v22, %v2283_v22  ;;  %v4104_v32 = vld [vmem:[%s4738_s18 + $0x1a4] ss:$8 sps:$4 sm:$0xff]   ;;  %v4107_v37 = vld [vmem:[%s4738_s18 + $0x1a0] ss:$8 sps:$4 sm:$0xff]   ;;  %v4110_v39 = vld [vmem:[%s4738_s18 + $0x194] ss:$8 sps:$4 sm:$0xff]  }
 0x26c   : > { %3158 = vmatprep.subr.bf16.mxu1 %v4056_v59  ;;  %v4112_v40 = vld [vmem:[%s4738_s18 + $0x90] ss:$8 sps:$4 sm:$0xff]   ;;  %v4114_v42 = vld [vmem:[%s4738_s18 + $0x84] ss:$8 sps:$4 sm:$0xff]   ;;  %v4118_v44 = vld [vmem:[%s4738_s18 + $0x80] ss:$8 sps:$4 sm:$0xff]  }
 0x26d   : > { %v2304_v28 = vcombine.high %v2296_v26, %v2296_v26  ;;  %v2303_v29 = vrot.slane %v2289_v57, %v5054_v63  ;;  %v4113_v41 = vld [vmem:[%s4738_s18 + $0x190] ss:$8 sps:$4 sm:$0xff]   ;;  %v4116_v43 = vld [vmem:[%s4738_s18 + $0x184] ss:$8 sps:$4 sm:$0xff]   ;;  %v4119_v45 = vld [vmem:[%s4738_s18 + $0x180] ss:$8 sps:$4 sm:$0xff]   ;;  %v2331_v49 = vpack.c.bf16 %v2296_v26, %v2296_v26 }
 0x26e   : > { %3118 = vmatpush1.bf16.msra.mxu0 %v4058_v61  ;;  %v4122_v46 = vld [vmem:[%s4738_s18 + $0x274] ss:$8 sps:$4 sm:$0xff]   ;;  %v4120_v51 = vld [vmem:[%s4738_s18 + $0x270] ss:$8 sps:$4 sm:$0xff]   ;;  %v4128_v53 = vld [vmem:[%s4738_s18 + $0x264] ss:$8 sps:$4 sm:$0xff]  }
 0x26f   : > { %3159 = vmatpush1.bf16.msra.mxu1 %v4059_v62  ;;  %3119 = vmatprep.subr.bf16.mxu0 %v4060_v19  ;;  %v2332_v33 = vpack.c.bf16 %v2304_v28, %v2304_v28  ;;  %v2305_v34 = vcombine.high %v2303_v29, %v2303_v29  ;;  %v4125_v47 = vld [vmem:[%s4738_s18 + $0x374] ss:$8 sps:$4 sm:$0xff]   ;;  %v2333_v50 = vpack.c.bf16 %v2303_v29, %v2303_v29  ;;  %v4123_v52 = vld [vmem:[%s4738_s18 + $0x370] ss:$8 sps:$4 sm:$0xff]   ;;  %v4131_v54 = vld [vmem:[%s4738_s18 + $0x364] ss:$8 sps:$4 sm:$0xff]  }
 0x270   : > { %3160 = vmatprep.subr.bf16.mxu1 %v4062_v27  ;;  %v4126_v55 = vld [vmem:[%s4738_s18 + $0x260] ss:$8 sps:$4 sm:$0xff]   ;;  %v4134_v58 = vld [vmem:[%s4738_s18 + $0x254] ss:$8 sps:$4 sm:$0xff]   ;;  %v4132_v61 = vld [vmem:[%s4738_s18 + $0x250] ss:$8 sps:$4 sm:$0xff]  }
 0x271   : > { %3139 = vmatprep.mubr.bf16.mxu0 %v2332_v33  ;;  %v2334_v36 = vpack.c.bf16 %v2305_v34, %v2305_v34  ;;  %v4129_v56 = vld [vmem:[%s4738_s18 + $0x360] ss:$8 sps:$4 sm:$0xff]   ;;  %v4137_v59 = vld [vmem:[%s4738_s18 + $0x354] ss:$8 sps:$4 sm:$0xff]   ;;  %v4135_v62 = vld [vmem:[%s4738_s18 + $0x350] ss:$8 sps:$4 sm:$0xff]  }
 0x272   : > { %3120 = vmatpush1.bf16.msra.mxu0 %v4064_v0  ;;  %v4140_v19 = vld [vmem:[%s4738_s18 + $0x244] ss:$8 sps:$4 sm:$0xff]   ;;  %v4138_v0 = vld [vmem:[%s4738_s18 + $0x240] ss:$8 sps:$4 sm:$0xff]   ;;  %v4170_v26 = vld [vmem:[%s4738_s18 + $0x2f4] ss:$8 sps:$4 sm:$0xff]  }
 0x273   : > { %3161 = vmatpush1.bf16.msra.mxu1 %v4065_v1  ;;  %3121 = vmatprep.subr.bf16.mxu0 %v4066_v2  ;;  %v4143_v27 = vld [vmem:[%s4738_s18 + $0x344] ss:$8 sps:$4 sm:$0xff]   ;;  %v4141_v1 = vld [vmem:[%s4738_s18 + $0x340] ss:$8 sps:$4 sm:$0xff]   ;;  %v4146_v2 = vld [vmem:[%s4738_s18 + $0x234] ss:$8 sps:$4 sm:$0xff]  }
 0x274   : > { %3162 = vmatprep.subr.bf16.mxu1 %v4068_v3  ;;  %3180 = vmatprep.mubr.bf16.mxu1 %v2334_v36  ;;  %v4149_v3 = vld [vmem:[%s4738_s18 + $0x334] ss:$8 sps:$4 sm:$0xff]   ;;  %v4162_v22 = vld [vmem:[%s4738_s18 + $0x200] ss:$8 sps:$4 sm:$0xff]   ;;  %v4171_v28 = vld [vmem:[%s4738_s18 + $0x3f0] ss:$8 sps:$4 sm:$0xff]  }
 0x275   : > { %v4173_v57 = vld [vmem:[%s4738_s18 + $0x3f4] ss:$8 sps:$4 sm:$0xff]   ;;  %v4176_v29 = vld [vmem:[%s4738_s18 + $0x2e4] ss:$8 sps:$4 sm:$0xff]   ;;  %v4183_v36 = vld [vmem:[%s4738_s18 + $0x3d0] ss:$8 sps:$4 sm:$0xff]  }
 0x276   : > { %3122 = vmatpush1.bf16.msra.mxu0 %v4070_v5  ;;  %v4144_v5 = vld [vmem:[%s4738_s18 + $0x230] ss:$8 sps:$4 sm:$0xff]   ;;  %v4182_v33 = vld [vmem:[%s4738_s18 + $0x2d4] ss:$8 sps:$4 sm:$0xff]  }
 0x277   : > { %3163 = vmatpush1.bf16.msra.mxu1 %v4071_v6  ;;  %3123 = vmatprep.subr.bf16.mxu0 %v4072_v7  ;;  %v4147_v6 = vld [vmem:[%s4738_s18 + $0x330] ss:$8 sps:$4 sm:$0xff]   ;;  %v4152_v7 = vld [vmem:[%s4738_s18 + $0x224] ss:$8 sps:$4 sm:$0xff]   ;;  %v4185_v34 = vld [vmem:[%s4738_s18 + $0x3d4] ss:$8 sps:$4 sm:$0xff]  }
 0x278   : > { %3164 = vmatprep.subr.bf16.mxu1 %v4074_v8  ;;  %v4155_v8 = vld [vmem:[%s4738_s18 + $0x324] ss:$8 sps:$4 sm:$0xff]  }
 0x27a   : > { %3124 = vmatpush2.bf16.msra.mxu0 %v4076_v4  ;;  %v4150_v4 = vld [vmem:[%s4738_s18 + $0x220] ss:$8 sps:$4 sm:$0xff]  }
 0x27b   : > { %3165 = vmatpush2.bf16.msra.mxu1 %v4077_v9  ;;  %3125 = vmatprep.subr.bf16.mxu0 %v4078_v10  ;;  %v4153_v9 = vld [vmem:[%s4738_s18 + $0x320] ss:$8 sps:$4 sm:$0xff]   ;;  %v4158_v10 = vld [vmem:[%s4738_s18 + $0x214] ss:$8 sps:$4 sm:$0xff]  }
 0x27c   : > { %3166 = vmatprep.subr.bf16.mxu1 %v4080_v11  ;;  %v4161_v11 = vld [vmem:[%s4738_s18 + $0x314] ss:$8 sps:$4 sm:$0xff]  }
 0x27e   : > { %3126 = vmatpush2.bf16.msra.mxu0 %v4082_v12  ;;  %v2282_v12 = vld [vmem:[#allocation2 + $0x8] sm:$0xff] }
 0x27f   : > { %3167 = vmatpush2.bf16.msra.mxu1 %v4083_v13  ;;  %3127 = vmatprep.subr.bf16.mxu0 %v4084_v48  ;;  %v2284_v13 = vmax.f32 %v2282_v12, 0.0  ;;  %v4156_v48 = vld [vmem:[%s4738_s18 + $0x210] ss:$8 sps:$4 sm:$0xff]  }
 0x280   : > { %3168 = vmatprep.subr.bf16.mxu1 %v4086_v14  ;;  %v4159_v14 = vld [vmem:[%s4738_s18 + $0x310] ss:$8 sps:$4 sm:$0xff]  }
 0x281   : > { %2286 = vst [vmem:[%s4752_s6 + $0x8] sm:$0xff] %v2284_v13 }
 0x282   : > { %3128 = vmatpush2.bf16.msra.mxu0 %v4088_v15  ;;  %v5158_v15 = vrot.slane %v2284_v13, %v5054_v63 }
 0x283   : > { %3169 = vmatpush2.bf16.msra.mxu1 %v4089_v16  ;;  %3129 = vmatprep.subr.bf16.mxu0 %v4090_v17  ;;  %v2306_v16 = vcombine.high %v2284_v13, %v2284_v13  ;;  %v4164_v17 = vld [vmem:[%s4738_s18 + $0x204] ss:$8 sps:$4 sm:$0xff]  }
 0x284   : > { %3170 = vmatprep.subr.bf16.mxu1 %v4092_v18  ;;  %v4167_v18 = vld [vmem:[%s4738_s18 + $0x304] ss:$8 sps:$4 sm:$0xff]   ;;  %v2321_v20 = vcombine.high %v5158_v15, %v5158_v15 }
 0x286   : > { %3130 = vmatpush2.bf16.msra.mxu0 %v4094_v21  ;;  %v5165_v21 = vrot.slane %v2306_v16, %v5054_v63 }
 0x287   : > { %3171 = vmatpush2.bf16.msra.mxu1 %v4095_v23  ;;  %3131 = vmatprep.subr.bf16.mxu0 %v4096_v24  ;;  %v4165_v23 = vld [vmem:[%s4738_s18 + $0x300] ss:$8 sps:$4 sm:$0xff]   ;;  %v2336_v24 = vpack.c.bf16 %v2321_v20, %v2321_v20 }
 0x288   : > { %3172 = vmatprep.subr.bf16.mxu1 %v4098_v25  ;;  %v2322_v25 = vcombine.high %v5165_v21, %v5165_v21 }
 0x28a   : > { %3132 = vmatpush2.bf16.msra.mxu0 %v4100_v60  ;;  %v2338_v63 = vpack.c.bf16 %v2322_v25, %v2322_v25  ;;  %v4168_v60 = vld [vmem:[%s4738_s18 + $0x2f0] ss:$8 sps:$4 sm:$0xff]  }
 0x28b   : > { %3173 = vmatpush2.bf16.msra.mxu1 %v4101_v30  ;;  %3133 = vmatprep.subr.bf16.mxu0 %v4102_v31  ;;  %v4179_v30 = vld [vmem:[%s4738_s18 + $0x3e4] ss:$8 sps:$4 sm:$0xff]   ;;  %v4174_v31 = vld [vmem:[%s4738_s18 + $0x2e0] ss:$8 sps:$4 sm:$0xff]  }
 0x28c   : > { %3174 = vmatprep.subr.bf16.mxu1 %v4104_v32  ;;  %v4177_v32 = vld [vmem:[%s4738_s18 + $0x3e0] ss:$8 sps:$4 sm:$0xff]  }
 0x28e   : > { %3134 = vmatpush2.bf16.msra.mxu0 %v4106_v35  ;;  %v4180_v35 = vld [vmem:[%s4738_s18 + $0x2d0] ss:$8 sps:$4 sm:$0xff]  }
 0x28f   : > { %3175 = vmatpush2.bf16.msra.mxu1 %v4107_v37  ;;  %3135 = vmatprep.subr.bf16.mxu0 %v4108_v38  ;;  %v4188_v37 = vld [vmem:[%s4738_s18 + $0x2c4] ss:$8 sps:$4 sm:$0xff]  }
 0x290   : > { %3176 = vmatprep.subr.bf16.mxu1 %v4110_v39  ;;  %v4191_v38 = vld [vmem:[%s4738_s18 + $0x3c4] ss:$8 sps:$4 sm:$0xff]   ;;  %v4186_v39 = vld [vmem:[%s4738_s18 + $0x2c0] ss:$8 sps:$4 sm:$0xff]  }
 0x292   : > { %3136 = vmatpush2.bf16.msra.mxu0 %v4112_v40  ;;  %v4189_v40 = vld [vmem:[%s4738_s18 + $0x3c0] ss:$8 sps:$4 sm:$0xff]  }
 0x293   : > { %3177 = vmatpush2.bf16.msra.mxu1 %v4113_v41  ;;  %3137 = vmatprep.subr.bf16.mxu0 %v4114_v42  ;;  %v4194_v41 = vld [vmem:[%s4738_s18 + $0x2b4] ss:$8 sps:$4 sm:$0xff]  }
 0x294   : > { %3178 = vmatprep.subr.bf16.mxu1 %v4116_v43  ;;  %v4197_v42 = vld [vmem:[%s4738_s18 + $0x3b4] ss:$8 sps:$4 sm:$0xff]   ;;  %v4192_v43 = vld [vmem:[%s4738_s18 + $0x2b0] ss:$8 sps:$4 sm:$0xff]  }
 0x296   : > { %3138 = vmatpush2.bf16.msra.mxu0 %v4118_v44  ;;  %v4195_v44 = vld [vmem:[%s4738_s18 + $0x3b0] ss:$8 sps:$4 sm:$0xff]  }
 0x297   : > { %3179 = vmatpush2.bf16.msra.mxu1 %v4119_v45  ;;  %3189 = vmatprep.subr.bf16.mxu0 %v4122_v46  ;;  %v4200_v45 = vld [vmem:[%s4738_s18 + $0x2a4] ss:$8 sps:$4 sm:$0xff]  }
 0x298   : > { %3230 = vmatprep.subr.bf16.mxu1 %v4125_v47  ;;  %v4203_v46 = vld [vmem:[%s4738_s18 + $0x3a4] ss:$8 sps:$4 sm:$0xff]   ;;  %v4198_v47 = vld [vmem:[%s4738_s18 + $0x2a0] ss:$8 sps:$4 sm:$0xff]  }
 0x299   : > { %3140 = vmatmul.mubr.bf16.vlgmr.msra.gmra.mxu0 %v2331_v49  ;;  %v4201_v49 = vld [vmem:[%s4738_s18 + $0x3a0] ss:$8 sps:$4 sm:$0xff]  }
 0x29a   : > { %3181 = vmatmul.mubr.bf16.vlgmr.msra.gmra.mxu1 %v2333_v50  ;;  %3190 = vmatpush1.bf16.msra.mxu0 %v4120_v51  ;;  %v4206_v50 = vld [vmem:[%s4738_s18 + $0x294] ss:$8 sps:$4 sm:$0xff]  }
 0x29b   : > { %3231 = vmatpush1.bf16.msra.mxu1 %v4123_v52  ;;  %3191 = vmatprep.subr.bf16.mxu0 %v4128_v53  ;;  %v4209_v51 = vld [vmem:[%s4738_s18 + $0x394] ss:$8 sps:$4 sm:$0xff]   ;;  %v4204_v52 = vld [vmem:[%s4738_s18 + $0x290] ss:$8 sps:$4 sm:$0xff]  }
 0x29c   : > { %3232 = vmatprep.subr.bf16.mxu1 %v4131_v54  ;;  %3221 = vmatprep.mubr.bf16.mxu0 %v2336_v24  ;;  %v4207_v53 = vld [vmem:[%s4738_s18 + $0x390] ss:$8 sps:$4 sm:$0xff]   ;;  %v4212_v54 = vld [vmem:[%s4738_s18 + $0x284] ss:$8 sps:$4 sm:$0xff]  }
 0x29d   : > { %3262 = vmatprep.mubr.bf16.mxu1 %v2338_v63 }
 0x29e   : > { %3192 = vmatpush1.bf16.msra.mxu0 %v4126_v55  ;;  %v4215_v55 = vld [vmem:[%s4738_s18 + $0x384] ss:$8 sps:$4 sm:$0xff]  }
 0x29f   : > { %3233 = vmatpush1.bf16.msra.mxu1 %v4129_v56  ;;  %3193 = vmatprep.subr.bf16.mxu0 %v4134_v58  ;;  %v4210_v56 = vld [vmem:[%s4738_s18 + $0x280] ss:$8 sps:$4 sm:$0xff]  }
 0x2a0   : > { %3234 = vmatprep.subr.bf16.mxu1 %v4137_v59  ;;  %v4213_v58 = vld [vmem:[%s4738_s18 + $0x380] ss:$8 sps:$4 sm:$0xff]   ;;  %v2335_v59 = vpack.c.bf16 %v5158_v15, %v5158_v15 }
 0x2a2   : > { %3194 = vmatpush1.bf16.msra.mxu0 %v4132_v61  ;;  %v2337_v61 = vpack.c.bf16 %v5165_v21, %v5165_v21 }
 0x2a3   : > { %3235 = vmatpush1.bf16.msra.mxu1 %v4135_v62  ;;  %3195 = vmatprep.subr.bf16.mxu0 %v4140_v19 }
 0x2a4   : > { %3236 = vmatprep.subr.bf16.mxu1 %v4143_v27 }
 0x2a6   : > { %3196 = vmatpush1.bf16.msra.mxu0 %v4138_v0 }
 0x2a7   : > { %3237 = vmatpush1.bf16.msra.mxu1 %v4141_v1  ;;  %3197 = vmatprep.subr.bf16.mxu0 %v4146_v2 }
 0x2a8   : > { %3238 = vmatprep.subr.bf16.mxu1 %v4149_v3 }
 0x2aa   : > { %3198 = vmatpush1.bf16.msra.mxu0 %v4144_v5 }
 0x2ab   : > { %3239 = vmatpush1.bf16.msra.mxu1 %v4147_v6  ;;  %3199 = vmatprep.subr.bf16.mxu0 %v4152_v7 }
 0x2ac   : > { %3240 = vmatprep.subr.bf16.mxu1 %v4155_v8 }
 0x2ae   : > { %3200 = vmatpush1.bf16.msra.mxu0 %v4150_v4 }
 0x2af   : > { %3241 = vmatpush1.bf16.msra.mxu1 %v4153_v9  ;;  %3201 = vmatprep.subr.bf16.mxu0 %v4158_v10 }
 0x2b0   : > { %3242 = vmatprep.subr.bf16.mxu1 %v4161_v11 }
 0x2b2   : > { %3202 = vmatpush1.bf16.msra.mxu0 %v4156_v48 }
 0x2b3   : > { %3243 = vmatpush1.bf16.msra.mxu1 %v4159_v14  ;;  %3203 = vmatprep.subr.bf16.mxu0 %v4164_v17 }
 0x2b4   : > { %3244 = vmatprep.subr.bf16.mxu1 %v4167_v18 }
 0x2b6   : > { %3204 = vmatpush1.bf16.msra.mxu0 %v4162_v22 }
 0x2b7   : > { %3245 = vmatpush1.bf16.msra.mxu1 %v4165_v23  ;;  %3205 = vmatprep.subr.bf16.mxu0 %v4170_v26 }
 0x2b8   : > { %3246 = vmatprep.subr.bf16.mxu1 %v4173_v57 }
 0x2ba   : > { %3206 = vmatpush2.bf16.msra.mxu0 %v4168_v60 }
 0x2bb   : > { %3247 = vmatpush2.bf16.msra.mxu1 %v4171_v28  ;;  %3207 = vmatprep.subr.bf16.mxu0 %v4176_v29 }
 0x2bc   : > { %3248 = vmatprep.subr.bf16.mxu1 %v4179_v30 }
 0x2be   : > { %3208 = vmatpush2.bf16.msra.mxu0 %v4174_v31 }
 0x2bf   : > { %3249 = vmatpush2.bf16.msra.mxu1 %v4177_v32  ;;  %3209 = vmatprep.subr.bf16.mxu0 %v4182_v33 }
 0x2c0   : > { %3250 = vmatprep.subr.bf16.mxu1 %v4185_v34 }
 0x2c2   : > { %3210 = vmatpush2.bf16.msra.mxu0 %v4180_v35 }
 0x2c3   : > { %3251 = vmatpush2.bf16.msra.mxu1 %v4183_v36  ;;  %3211 = vmatprep.subr.bf16.mxu0 %v4188_v37 }
 0x2c4   : > { %3252 = vmatprep.subr.bf16.mxu1 %v4191_v38 }
 0x2c6   : > { %3212 = vmatpush2.bf16.msra.mxu0 %v4186_v39 }
 0x2c7   : > { %3253 = vmatpush2.bf16.msra.mxu1 %v4189_v40  ;;  %3213 = vmatprep.subr.bf16.mxu0 %v4194_v41 }
 0x2c8   : > { %3254 = vmatprep.subr.bf16.mxu1 %v4197_v42 }
 0x2ca   : > { %3214 = vmatpush2.bf16.msra.mxu0 %v4192_v43 }
 0x2cb   : > { %3255 = vmatpush2.bf16.msra.mxu1 %v4195_v44  ;;  %3215 = vmatprep.subr.bf16.mxu0 %v4200_v45 }
 0x2cc   : > { %3256 = vmatprep.subr.bf16.mxu1 %v4203_v46 }
 0x2ce   : > { %3216 = vmatpush2.bf16.msra.mxu0 %v4198_v47 }
 0x2cf   : > { %3257 = vmatpush2.bf16.msra.mxu1 %v4201_v49  ;;  %3217 = vmatprep.subr.bf16.mxu0 %v4206_v50 }
 0x2d0   : > { %3258 = vmatprep.subr.bf16.mxu1 %v4209_v51 }
 0x2d2   : > { %3218 = vmatpush2.bf16.msra.mxu0 %v4204_v52 }
 0x2d3   : > { %3259 = vmatpush2.bf16.msra.mxu1 %v4207_v53  ;;  %3219 = vmatprep.subr.bf16.mxu0 %v4212_v54 }
 0x2d4   : > { %3260 = vmatprep.subr.bf16.mxu1 %v4215_v55 }
 0x2d6   : > { %3220 = vmatpush2.bf16.msra.mxu0 %v4210_v56 }
 0x2d7   : > { %3261 = vmatpush2.bf16.msra.mxu1 %v4213_v58 }
 0x2d9   : > { %3222 = vmatmul.mubr.bf16.vlgmr.msra.gmra.mxu0 %v2335_v59 }
 0x2da   : > { %3263 = vmatmul.mubr.bf16.vlgmr.msra.gmra.mxu1 %v2337_v61 }
 0x359   : > { %v3141_v62 = vpop.f32.mrf.mxu0 }
 0x35a   : > { %v3182_v19 = vpop.f32.mrf.mxu1 }
 0x35b   : > { %v3183_v27 = vadd.f32 %v3182_v19, %v3141_v62  ;;  %v3143_v0 = vpop.f32.mrf.mxu0 }
 0x35c   : > { %v3184_v1 = vpop.f32.mrf.mxu1 }
 0x35d   : > { %v3145_v2 = vpop.f32.mrf.mxu0  ;;  %v3185_v4 = vadd.f32 %v3184_v1, %v3143_v0 }
 0x35e   : > { %v3186_v3 = vpop.f32.mrf.mxu1 }
 0x35f   : > { %v3146_v5 = vpop.f32.mrf.mxu0 }
 0x360   : > { %v3187_v6 = vpop.f32.mrf.mxu1 }
 0x399   : > { %v3223_v7 = vpop.f32.mrf.mxu0 }
 0x39a   : > { %v3264_v8 = vpop.f32.mrf.mxu1  ;;  %v3224_v9 = vadd.f32 %v3223_v7, %v3183_v27 }
 0x39b   : > { %v3225_v10 = vpop.f32.mrf.mxu0 }
 0x39c   : > { %v3266_v11 = vpop.f32.mrf.mxu1  ;;  %v3226_v12 = vadd.f32 %v3225_v10, %v3185_v4  ;;  %v3265_v14 = vadd.f32 %v3264_v8, %v3224_v9 }
 0x39d   : > { %v3227_v13 = vpop.f32.mrf.mxu0 }
 0x39e   : > { %v3268_v48 = vpop.f32.mrf.mxu1  ;;  %v3267_v15 = vadd.f32 %v3266_v11, %v3226_v12 }
 0x39f   : > { %v3228_v16 = vpop.f32.mrf.mxu0 }
 0x3a0   : > { %v3269_v17 = vpop.f32.mrf.mxu1  ;;  %v3273_v18 = vcombine.low %v3265_v14, %v3267_v15 }
 0x3a2   : > { %3868 = vst.sshfl [vmem:[%s4750_s24] sm:$0x33 pattern:$0x76325410] %v3273_v18 }
 0x3a3 PF: > { %s5326_s4 = sld [smem:[#allocation15_spill]]  ;;  %s3306_s12 = sshll.u32 %s4752_s6, 4  ;;  %s3307_s12 = int_to_ptr.vmem [resolvable:$true] %s3306_s12 }
 0x3a4   : > { %s5327_s7 = sld [smem:[#allocation23_spill]]  ;;  %s3289_s5 = scalar_lea.sflag [#allocation5], %s4735_s21 }
 0x3a5   : > { %s4300_s29 = scalar_lea.vmem %s3307_s12, 256  ;;  %p5328_p8 = scmp.ne.s32.totalorder %s5317_s3, 0 }
 0x3a6   : > { %p4301_p10 = scmp.ne.s32.totalorder %s3307_s12, %s4300_s29  ;;  %s4465_s11 = smov [#allocation9]  }
 0x3a7   : > { %s4304_s9 = sshll.u32 %s4465_s11, 4  ;;  %s4305_s9 = int_to_ptr.vmem [resolvable:$false] %s4304_s9 }
 0x3a8   : > { %p4302_p2 = pnand %p4301_p10, %p5328_p8  ;;  %s4306_s0 = scalar_lea.vmem %s4305_s9, 512 }
 0x3a9   : > { %s3879_s26 = sshll.u32 %s5326_s4, 8  ;;  %p4307_p9 = scmp.lt.s32.totalorder %s3307_s12, %s4305_s9 }
 0x3aa   : > { %s3304_s18 = scalar_lea.hbm %s5327_s7, %s3879_s26  ;;  %p4303_p5 = pneg %p4302_p2 }
 0x3ab   : > { %p4308_p0 = scmp.lt.s32.totalorder %s4306_s0, %s4300_s29 }
 0x3ad   : > { %p4309_p12 = por %p4308_p0, %p4307_p9 }
 0x3af   : > { %p4310_p13 = pnand %p4309_p12, %p4303_p5 }
 0x3b1   : > { %4313 = shalt.err (!%p4310_p13)
}
 0x3b2   : > { %s4314_s24 = scalar_lea.hbm %s3304_s18, 256  ;;  %s4318_s10 = scalar_lea.hbm %s5327_s7, 512 }
 0x3b3   : > { %p4315_p11 = scmp.ne.s32.totalorder %s3304_s18, %s4314_s24  ;;  %p4319_p7 = scmp.lt.s32.totalorder %s3304_s18, %s5327_s7 }
 0x3b4   : > { %p4320_p1 = scmp.lt.s32.totalorder %s4318_s10, %s4314_s24 }
 0x3b5   : > { %p4316_p6 = pnand %p4315_p11, %p5328_p8 }
 0x3b6   : > { %p4321_p3 = por %p4320_p1, %p4319_p7 }
 0x3b7   : > { %p4317_p4 = pneg %p4316_p6 }
 0x3b9   : > { %p4322_p10 = pnand %p4321_p3, %p4317_p4 }
 0x3bb   : > { %4325 = shalt.err (!%p4322_p10)
}
 0x3bc   : > { %3886 = dma.vmem_to_hbm [thread:$0]  (%p5328_p8), %s3307_s12, 256, %s3304_s18, %s3289_s5  }
 0x3bd PF: > { %p3903_p2 = scmp.ge.s32.totalorder %s4452_s28, 2  ;;  %s3326_s26 = sand.u32 1, %s4400_s15  }
 0x3be   : > { %p5329_p5 = scmp.ne.s32.totalorder %s5318_s8, 0  ;;  %s3327_s13 = scalar_lea.sflag [#allocation5], %s3326_s26 }
 0x3c0   : > { %p3899_p9 = pnand %p3903_p2, %p5329_p5 }
 0x3c2   : > { %p3900_p0 = pneg %p3899_p9 }
 0x3c4   : > { %4395 = dma.done.wait (%p3900_p0), %s3327_s13, 256  }
 0x3c5   : > { %4397 = vsyncadd (%p3900_p0), %s3327_s13, 4294967040  ;;  %s24_s28 = sadd.s32 1, %s4452_s28   ;;  %s5331_s3 = sld [smem:[#allocation19_spill]] }
 0x3c6   : > { %p5231_p12 = scmp.ge.s32.totalorder %s24_s28, 6   ;;  %s5332_s24 = sld [smem:[#allocation16_spill]] }
 0x3c7   : > { %s5333_s26 = sld [smem:[#allocation17_spill]]  ;;  %s5336_s15 = smov %s4404_s16 }
 0x3c8   : > { %s5334_s8 = sld [smem:[#allocation18_spill]]  ;;  %s5337_s16 = smov %s4408_s17 }
 0x3c9   : > { %s5338_s17 = smov %s4676_s14  ;;  %s5339_s18 = smov %s4416_s19 }
 0x3ca   : > { %s5340_s19 = smov %s4420_s20  ;;  %s5341_s20 = smov %s4654_s1 }
 0x3cb   : > { %s5342_s21 = smov %s4428_s22  ;;  %s5343_s22 = smov %s4432_s23 }
 0x3cc   : > { %s5344_s23 = smov %s5331_s3  ;;  %s5345_s25 = smov %s4448_s27 }
 0x3cd   :  { %23 = sbr.rel (!%p5231_p12) target bundleno = 17 (0x11), region = 121 }
 0x3ce   : > { %s5346_s27 = smov %s5334_s8 }
 0x3d2   :  { %3332 = vsyncpa [#allocation4], 1 }
 0x3d3   :  { %3334 = vsyncpa [#allocation4 + $0x1], 1 }
 0x3d4   :  { %3335 = vsyncpa [#allocation7], 1 }
 0x3d5   :  { %3337 = vsyncpa [#allocation7 + $0x1], 1 }
 0x3d6   :  { %3338 = vsyncpa [#allocation5], 1 }
 0x3d7   :  { %3340 = vsyncpa [#allocation5 + $0x1], 1 }

</bundles_post_ra>
